<compile_context>
chip_gen: v6e
topology: v6e:2x2x1
jax: 0.10.0
libtpu: 0.0.40
codegen_flags: <defaults>
</compile_context>

<pallas_src>
import math

import jax
import jax.numpy as jnp
from jax.experimental import pallas as pl

# ----------------------------- model dimensions ------------------------------------
OUT_DIM = 16          # out_dim
NUM_TOKENS = 8        # num_tokens
V_DIM = 32            # v_dim
HIDDEN = 32           # transformer-mapping hidden size (== t_dim)
INTERMEDIATE = 64     # FFN intermediate size
NUM_HEADS = 4
HEAD_DIM = HIDDEN // NUM_HEADS
LN_EPS = 1e-12        # BertConfig.layer_norm_eps
CROSS_ATTN_LEN = 32   # transformer_mapping_cross_attention_length
MLP_HID = OUT_DIM * NUM_TOKENS // 2      # 64
MLP_OUT = OUT_DIM * NUM_TOKENS           # 128

# ----------------------------- packed-operand layouts ------------------------------
def _layout(entries):
    offs, o = {}, 0
    for name, width in entries:
        offs[name] = (o, width)
        o += width
    return offs, o


# fin == 32 weight slab (V_DIM == HIDDEN == 32).  "out_w" is zero-padded to 128 output
# columns so the final matmul result / store is lane-dense.
_W32_OFF, _W32_COLS = _layout((
    ("out_w", 128),
    ("sa_qkv_w", 3 * HIDDEN),
    ("in_w", HIDDEN),
    ("ca_kv_w", 2 * HIDDEN),
    ("ff_w1", INTERMEDIATE),
    ("mlp_w1", MLP_HID),
    ("ca_q_w", HIDDEN),
    ("sa_o_w", HIDDEN),
    ("ca_o_w", HIDDEN),
))                                                   # 544 columns total

# fin == 64 weight slab (INTERMEDIATE == MLP hidden == 64).
_W64_OFF, _W64_COLS = _layout((
    ("mlp_w2", MLP_OUT),
    ("ff_w2", HIDDEN),
))                                                   # 160 columns total

# one (rows, 128) slab for every bias / LayerNorm gamma & beta: row r, lanes [0, width).
_BIAS_LAYOUT = (
    ("in_b", HIDDEN), ("sa_qkv_b", 3 * HIDDEN), ("sa_o_b", HIDDEN),
    ("ln1_g", HIDDEN), ("ln1_b", HIDDEN),
    ("ca_q_b", HIDDEN), ("ca_kv_b", 2 * HIDDEN), ("ca_o_b", HIDDEN),
    ("ln2_g", HIDDEN), ("ln2_b", HIDDEN),
    ("ff_b1", INTERMEDIATE), ("ff_b2", HIDDEN),
    ("ln3_g", HIDDEN), ("ln3_b", HIDDEN),
    ("out_b", 128), ("mlp_b1", MLP_HID), ("mlp_b2", MLP_OUT),
)
_BIAS_ROW = {name: i for i, (name, _) in enumerate(_BIAS_LAYOUT)}
_BIAS_WIDTH = dict(_BIAS_LAYOUT)
_BIAS_ROWS = (len(_BIAS_LAYOUT) + 7) // 8 * 8        # 24 rows (sublane-padded)


# ----------------------------- in-kernel helpers ------------------------------------
def _erf(x):
    # Abramowitz & Stegun 7.1.26 polynomial (|err| < 1.5e-7); basic VPU/EUP ops only.
    a1, a2, a3, a4, a5 = 0.254829592, -0.284496736, 1.421413741, -1.453152027, 1.061405429
    p = 0.3275911
    sgn = jnp.where(x >= 0.0, 1.0, -1.0)
    ax = jnp.abs(x)
    t = 1.0 / (1.0 + p * ax)
    poly = ((((a5 * t + a4) * t + a3) * t + a2) * t + a1) * t
    return sgn * (1.0 - poly * jnp.exp(-ax * ax))


def _gelu_erf(x):
    return 0.5 * x * (1.0 + _erf(x * 0.7071067811865476))


# ----------------------------- the fused forward kernel -----------------------------
def _fused_kernel(t_ref, vcls_ref, vrest_ref, w32_ref, w64_ref, b_ref,
                  o_vis_ref, o_map_ref):
    B, St, H = t_ref.shape
    Sv = vrest_ref.shape[1]

    def w32(name):
        o, w = _W32_OFF[name]
        return w32_ref[:, o:o + w]

    def w64(name):
        o, w = _W64_OFF[name]
        return w64_ref[:, o:o + w]

    def bias(name):
        r = _BIAS_ROW[name]
        return b_ref[r:r + 1, 0:_BIAS_WIDTH[name]]

    def lin32(x2d, wname, bname):     # (M, 32) @ (32, Fout) + (1, Fout), single MXU op
        return jnp.dot(x2d, w32(wname), preferred_element_type=jnp.float32) + bias(bname)

    def lin64(x2d, wname, bname):     # (M, 64) @ (64, Fout) + (1, Fout)
        return jnp.dot(x2d, w64(wname), preferred_element_type=jnp.float32) + bias(bname)

    def layer_norm(x2d, gname, bname):
        mu = jnp.mean(x2d, axis=-1, keepdims=True)
        d = x2d - mu
        var = jnp.mean(d * d, axis=-1, keepdims=True)
        return d * jax.lax.rsqrt(var + LN_EPS) * bias(gname) + bias(bname)

    def attend(q3, k3, v3, o_wname):
        # q3: (B, Sq, H); k3/v3: (B, Sk, H).  Per-head score/context on static 8-lane
        # slices; head merge = sum over per-head output projections with sublane-aligned
        # Wo row blocks.  No attention bias: the extended cross-attn mask is identically 0.
        bq = q3.shape[0] * q3.shape[1]
        o_off, _ = _W32_OFF[o_wname]
        scale = 1.0 / math.sqrt(HEAD_DIM)
        out = None
        for h in range(NUM_HEADS):                                    # static unroll
            lo = h * HEAD_DIM
            qh = q3[..., lo:lo + HEAD_DIM]
            kh = k3[..., lo:lo + HEAD_DIM]
            vh = v3[..., lo:lo + HEAD_DIM]
            s = jnp.einsum("bqd,bkd->bqk", qh, kh,
                           preferred_element_type=jnp.float32) * scale
            s = s - jnp.max(s, axis=-1, keepdims=True)
            e = jnp.exp(s)
            # approx reciprocal runs on the EUP slot; accurate enough for inference.
            pr = e * pl.reciprocal(jnp.sum(e, axis=-1, keepdims=True), approx=True)
            ctx = jnp.einsum("bqk,bkd->bqd", pr, vh,
                             preferred_element_type=jnp.float32)
            wo_h = w32_ref[lo:lo + HEAD_DIM, o_off:o_off + HIDDEN]    # (HD, H) row block
            part = jnp.dot(ctx.reshape(bq, HEAD_DIM), wo_h,
                           preferred_element_type=jnp.float32)
            out = part if out is None else out + part
        return out                                                    # (B*Sq, H), no bias

    # ---- context_vis_proj MLP on the CLS token: lane-dense (B, NUM_TOKENS*OUT_DIM) ----
    hid = jnp.tanh(lin32(vcls_ref[...], "mlp_w1", "mlp_b1"))
    o_vis_ref[...] = lin64(hid, "mlp_w2", "mlp_b2")                   # (B, 128)

    # ---- transformer_mapping_input_linear ----
    x = lin32(vrest_ref[...].reshape(B * Sv, V_DIM), "in_w", "in_b")  # (B*Sv, H)

    # ---- BertLayer: self-attention (unmasked) ----
    qkv = lin32(x, "sa_qkv_w", "sa_qkv_b").reshape(B, Sv, 3 * H)
    sa = attend(qkv[..., 0:H], qkv[..., H:2 * H], qkv[..., 2 * H:3 * H], "sa_o_w")
    h1 = layer_norm(sa + bias("sa_o_b") + x, "ln1_g", "ln1_b")

    # ---- BertLayer: cross-attention (Q from vision stream, K/V from text).
    #      encoder_mask == ones_like(t_attn_mask) => extended mask ≡ 0, so no bias. ----
    q_ca = lin32(h1, "ca_q_w", "ca_q_b").reshape(B, Sv, H)
    kv = lin32(t_ref[...].reshape(B * St, H), "ca_kv_w", "ca_kv_b").reshape(B, St, 2 * H)
    ca = attend(q_ca, kv[..., 0:H], kv[..., H:2 * H], "ca_o_w")
    h2 = layer_norm(ca + bias("ca_o_b") + h1, "ln2_g", "ln2_b")

    # ---- BertLayer: feed-forward (exact-erf GELU) ----
    ff = _gelu_erf(lin32(h2, "ff_w1", "ff_b1"))
    ff = lin64(ff, "ff_w2", "ff_b2")
    h3 = layer_norm(ff + h2, "ln3_g", "ln3_b")

    # ---- transformer_mapping_output_linear: weight/bias zero-padded to 128 lanes so the
    #      matmul result and store are lane-dense (wrapper slices back to OUT_DIM). ----
    o_map_ref[...] = lin32(h3, "out_w", "out_b")                      # (B*Sv, 128)


# ----------------------------- host-side packing & wrapper --------------------------
def pack_params(p):
    """Pack all weights/biases into 3 pre-tiled slabs (3 DMA descriptors instead of ~34)."""
    cat = lambda names: jnp.concatenate([p[n] for n in names], axis=-1)

    mats32 = {
        "out_w": p["out_w"],                                # (32, 16) -> zero-padded slot
        "sa_qkv_w": cat(("sa_q_w", "sa_k_w", "sa_v_w")),
        "in_w": p["in_w"],
        "ca_kv_w": cat(("ca_k_w", "ca_v_w")),
        "ff_w1": p["ff_w1"],
        "mlp_w1": p["mlp_w1"],
        "ca_q_w": p["ca_q_w"],
        "sa_o_w": p["sa_o_w"],
        "ca_o_w": p["ca_o_w"],
    }
    w32 = jnp.zeros((HIDDEN, _W32_COLS), jnp.float32)
    for name, (off, _) in _W32_OFF.items():
        m = mats32[name]
        w32 = w32.at[:, off:off + m.shape[1]].set(m)

    mats64 = {"mlp_w2": p["mlp_w2"], "ff_w2": p["ff_w2"]}
    w64 = jnp.zeros((INTERMEDIATE, _W64_COLS), jnp.float32)
    for name, (off, _) in _W64_OFF.items():
        m = mats64[name]
        w64 = w64.at[:, off:off + m.shape[1]].set(m)

    fused_b = {"sa_qkv_b": cat(("sa_q_b", "sa_k_b", "sa_v_b")),
               "ca_kv_b": cat(("ca_k_b", "ca_v_b"))}
    bslab = jnp.zeros((_BIAS_ROWS, 128), jnp.float32)
    for name, _ in _BIAS_LAYOUT:
        vec = fused_b[name] if name in fused_b else p[name]
        bslab = bslab.at[_BIAS_ROW[name], :vec.shape[0]].set(vec)

    return {"w32": w32, "w64": w64, "bias": bslab}


def preflmr_sampler_forward(packed, t, v, t_attn_mask):
    # The module only uses t_attn_mask through ones_like(...) -> extended mask is zero,
    # so it is dropped entirely (no operand DMA, no per-head add).
    del t_attn_mask
    bsz, lv, _ = v.shape
    sv = lv - 1
    if t.shape[1] > CROSS_ATTN_LEN:
        t = t[:, :CROSS_ATTN_LEN]
    v_cls = v[:, 0, :]                                       # (B, V_DIM)
    v_rest = v[:, 1:, :]                                     # (B, Sv, V_DIM)

    # Grid-less single launch (whole arrays resident in VMEM): 6 input + 2 output DMAs.
    out_vis, out_map = pl.pallas_call(
        _fused_kernel,
        out_shape=(
            jax.ShapeDtypeStruct((bsz, MLP_OUT), jnp.float32),     # lane-dense (B, 128)
            jax.ShapeDtypeStruct((bsz * sv, 128), jnp.float32),    # lane-dense, padded
        ),
    )(t, v_cls, v_rest, packed["w32"], packed["w64"], packed["bias"])

    vis = out_vis.reshape(bsz, NUM_TOKENS, OUT_DIM)
    mapped = out_map[:, :OUT_DIM].reshape(bsz, sv, OUT_DIM)    # free XLA slice/reshape
    return jnp.concatenate([vis, mapped], axis=1)


# ----------------------------- synthetic parameters & reference ---------------------
def init_params(key):
    keys = iter(jax.random.split(key, 40))

    def w(*shape, scale=0.02):
        return (scale * jax.random.normal(next(keys), shape)).astype(jnp.float32)

    p = {
        "mlp_w1": w(V_DIM, MLP_HID), "mlp_b1": w(MLP_HID, scale=0.01),
        "mlp_w2": w(MLP_HID, MLP_OUT), "mlp_b2": w(MLP_OUT, scale=0.01),
        "in_w": w(V_DIM, HIDDEN), "in_b": w(HIDDEN, scale=0.01),
        "ff_w1": w(HIDDEN, INTERMEDIATE), "ff_b1": w(INTERMEDIATE, scale=0.01),
        "ff_w2": w(INTERMEDIATE, HIDDEN), "ff_b2": w(HIDDEN, scale=0.01),
        "out_w": w(HIDDEN, OUT_DIM), "out_b": w(OUT_DIM, scale=0.01),
    }
    for i in (1, 2, 3):
        p[f"ln{i}_g"] = (1.0 + 0.01 * jax.random.normal(next(keys), (HIDDEN,))).astype(jnp.float32)
        p[f"ln{i}_b"] = w(HIDDEN, scale=0.01)
    for pre in ("sa", "ca"):
        for nm in ("q", "k", "v", "o"):
            p[f"{pre}_{nm}_w"] = w(HIDDEN, HIDDEN)
            p[f"{pre}_{nm}_b"] = w(HIDDEN, scale=0.01)
    return p


def reference_forward(p, t, v, t_attn_mask):
    """Pure-JAX reference mirroring the PyTorch module (eval mode)."""
    del t_attn_mask
    bsz = v.shape[0]
    if t.shape[1] > CROSS_ATTN_LEN:
        t = t[:, :CROSS_ATTN_LEN]
    v_cls = v[:, 0]
    hid = jnp.tanh(v_cls @ p["mlp_w1"] + p["mlp_b1"])
    vis = (hid @ p["mlp_w2"] + p["mlp_b2"]).reshape(bsz, NUM_TOKENS, OUT_DIM)
    x = v[:, 1:] @ p["in_w"] + p["in_b"]

    def ln(y, g, b):
        mu = y.mean(-1, keepdims=True)
        var = ((y - mu) ** 2).mean(-1, keepdims=True)
        return (y - mu) / jnp.sqrt(var + LN_EPS) * g + b

    def mha(xq, xkv, pre):
        B, Sq, _ = xq.shape

        def heads(z):
            return z.reshape(B, -1, NUM_HEADS, HEAD_DIM).transpose(0, 2, 1, 3)

        q = heads(xq @ p[f"{pre}_q_w"] + p[f"{pre}_q_b"])
        k = heads(xkv @ p[f"{pre}_k_w"] + p[f"{pre}_k_b"])
        vv = heads(xkv @ p[f"{pre}_v_w"] + p[f"{pre}_v_b"])
        s = jnp.einsum("bhqd,bhkd->bhqk", q, k) / math.sqrt(HEAD_DIM)
        a = jax.nn.softmax(s, axis=-1)
        ctx = jnp.einsum("bhqk,bhkd->bhqd", a, vv)
        ctx = ctx.transpose(0, 2, 1, 3).reshape(B, Sq, HIDDEN)
        return ctx @ p[f"{pre}_o_w"] + p[f"{pre}_o_b"]

    h1 = ln(mha(x, x, "sa") + x, p["ln1_g"], p["ln1_b"])
    h2 = ln(mha(h1, t, "ca") + h1, p["ln2_g"], p["ln2_b"])
    ff = h2 @ p["ff_w1"] + p["ff_b1"]
    ff = 0.5 * ff * (1.0 + jax.lax.erf(ff * 0.7071067811865476))
    ff = ff @ p["ff_w2"] + p["ff_b2"]
    h3 = ln(ff + h2, p["ln3_g"], p["ln3_b"])
    mapped = h3 @ p["out_w"] + p["out_b"]
    return jnp.concatenate([vis, mapped], axis=1)


# ----------------------------- main --------------------------------------------------
if __name__ == "__main__":
    key = jax.random.PRNGKey(0)
    k_p, k_t, k_v = jax.random.split(key, 3)

    B, LV, T_SEQ = 2, 9, 40   # T_SEQ > 32 exercises the cross-attention-length truncation
    params = init_params(k_p)
    packed = pack_params(params)   # one-time host-side operand packing

    t = jax.random.normal(k_t, (B, T_SEQ, HIDDEN), jnp.float32)   # text hidden states
    v = jax.random.normal(k_v, (B, LV, V_DIM), jnp.float32)       # vision features (CLS + patches)
    t_attn_mask = jnp.ones((B, T_SEQ), jnp.int32)

    fwd = jax.jit(preflmr_sampler_forward)
    out = jax.block_until_ready(fwd(packed, t, v, t_attn_mask))

    assert out.shape == (B, NUM_TOKENS + LV - 1, OUT_DIM), out.shape
    assert bool(jnp.all(jnp.isfinite(out)))

    ref = reference_forward(params, t, v, t_attn_mask)
    err = float(jnp.max(jnp.abs(out - ref)))
    assert err < 5e-3, f"max abs err vs reference = {err}"

    print("KERNEL_OK")
</pallas_src>

<mosaic_0001>
module attributes {stable_mosaic.version = 11 : i64} {
  func.func @_fused_kernel(%arg0: memref<2x32x32xf32, #tpu.memory_space<vmem>>, %arg1: memref<2x32xf32, #tpu.memory_space<vmem>>, %arg2: memref<2x8x32xf32, #tpu.memory_space<vmem>>, %arg3: memref<32x544xf32, #tpu.memory_space<vmem>>, %arg4: memref<64x160xf32, #tpu.memory_space<vmem>>, %arg5: memref<24x128xf32, #tpu.memory_space<vmem>>, %arg6: memref<2x128xf32, #tpu.memory_space<vmem>>, %arg7: memref<16x128xf32, #tpu.memory_space<vmem>>) attributes {dimension_semantics = [], scalar_prefetch = 0 : i64, scratch_operands = 0 : i64, tpu.core_type = #tpu.core_type<tc>} {
    %c0 = arith.constant 0 : index
    %c0_0 = arith.constant 0 : index
    %0 = vector.load %arg1[%c0, %c0_0] : memref<2x32xf32, #tpu.memory_space<vmem>>, vector<2x32xf32>
    %c0_1 = arith.constant 0 : index
    %c384 = arith.constant 384 : index
    %1 = vector.load %arg3[%c0_1, %c384] : memref<32x544xf32, #tpu.memory_space<vmem>>, vector<32x64xf32>
    %cst = arith.constant dense<0.000000e+00> : vector<2x64xf32>
    %2 = tpu.matmul %0, %1, %cst {dimension_numbers = #tpu.dot_dimension_numbers<[1], [0], [0], [1], [0, 0, 1, 1], [], []>} : vector<2x32xf32>, vector<32x64xf32>, vector<2x64xf32> -> vector<2x64xf32>
    %c15 = arith.constant 15 : index
    %c0_2 = arith.constant 0 : index
    %3 = vector.load %arg5[%c15, %c0_2] : memref<24x128xf32, #tpu.memory_space<vmem>>, vector<1x64xf32>
    %4 = vector.broadcast %3 : vector<1x64xf32> to vector<2x64xf32>
    %5 = arith.addf %2, %4 : vector<2x64xf32>
    %6 = math.tanh %5 : vector<2x64xf32>
    %c0_3 = arith.constant 0 : index
    %c0_4 = arith.constant 0 : index
    %7 = vector.load %arg4[%c0_3, %c0_4] : memref<64x160xf32, #tpu.memory_space<vmem>>, vector<64x128xf32>
    %cst_5 = arith.constant dense<0.000000e+00> : vector<2x128xf32>
    %8 = tpu.matmul %6, %7, %cst_5 {dimension_numbers = #tpu.dot_dimension_numbers<[1], [0], [0], [1], [0, 0, 1, 1], [], []>} : vector<2x64xf32>, vector<64x128xf32>, vector<2x128xf32> -> vector<2x128xf32>
    %c16 = arith.constant 16 : index
    %c0_6 = arith.constant 0 : index
    %9 = vector.load %arg5[%c16, %c0_6] : memref<24x128xf32, #tpu.memory_space<vmem>>, vector<1x128xf32>
    %10 = vector.broadcast %9 : vector<1x128xf32> to vector<2x128xf32>
    %11 = arith.addf %8, %10 : vector<2x128xf32>
    %c0_7 = arith.constant 0 : index
    %c0_8 = arith.constant 0 : index
    %12 = vector.load %arg6[%c0_7, %c0_8] : memref<2x128xf32, #tpu.memory_space<vmem>>, vector<2x128xf32>
    tpu.vector_store %arg6[%c0_7, %c0_8], %11 {strides = array<i32>} : memref<2x128xf32, #tpu.memory_space<vmem>>, vector<2x128xf32>,
    %c0_9 = arith.constant 0 : index
    %c0_10 = arith.constant 0 : index
    %c0_11 = arith.constant 0 : index
    %13 = vector.load %arg2[%c0_9, %c0_10, %c0_11] : memref<2x8x32xf32, #tpu.memory_space<vmem>>, vector<2x8x32xf32>
    %14 = vector.shape_cast %13 : vector<2x8x32xf32> to vector<16x32xf32>
    %c0_12 = arith.constant 0 : index
    %c224 = arith.constant 224 : index
    %15 = vector.load %arg3[%c0_12, %c224] : memref<32x544xf32, #tpu.memory_space<vmem>>, vector<32x32xf32>
    %cst_13 = arith.constant dense<0.000000e+00> : vector<16x32xf32>
    %16 = tpu.matmul %14, %15, %cst_13 {dimension_numbers = #tpu.dot_dimension_numbers<[1], [0], [0], [1], [0, 0, 1, 1], [], []>} : vector<16x32xf32>, vector<32x32xf32>, vector<16x32xf32> -> vector<16x32xf32>
    %c0_14 = arith.constant 0 : index
    %c0_15 = arith.constant 0 : index
    %17 = vector.load %arg5[%c0_14, %c0_15] : memref<24x128xf32, #tpu.memory_space<vmem>>, vector<1x32xf32>
    %18 = vector.broadcast %17 : vector<1x32xf32> to vector<16x32xf32>
    %19 = arith.addf %16, %18 : vector<16x32xf32>
    %c0_16 = arith.constant 0 : index
    %c128 = arith.constant 128 : index
    %20 = vector.load %arg3[%c0_16, %c128] : memref<32x544xf32, #tpu.memory_space<vmem>>, vector<32x96xf32>
    %cst_17 = arith.constant dense<0.000000e+00> : vector<16x96xf32>
    %21 = tpu.matmul %19, %20, %cst_17 {dimension_numbers = #tpu.dot_dimension_numbers<[1], [0], [0], [1], [0, 0, 1, 1], [], []>} : vector<16x32xf32>, vector<32x96xf32>, vector<16x96xf32> -> vector<16x96xf32>
    %c1 = arith.constant 1 : index
    %c0_18 = arith.constant 0 : index
    %22 = vector.load %arg5[%c1, %c0_18] : memref<24x128xf32, #tpu.memory_space<vmem>>, vector<1x96xf32>
    %23 = vector.broadcast %22 : vector<1x96xf32> to vector<16x96xf32>
    %24 = arith.addf %21, %23 : vector<16x96xf32>
    %25 = vector.shape_cast %24 : vector<16x96xf32> to vector<2x8x96xf32>
    %26 = vector.extract_strided_slice %25 {offsets = [0, 0, 0], sizes = [2, 8, 32], strides = [1, 1, 1]} : vector<2x8x96xf32> to vector<2x8x32xf32>
    %27 = vector.extract_strided_slice %25 {offsets = [0, 0, 32], sizes = [2, 8, 32], strides = [1, 1, 1]} : vector<2x8x96xf32> to vector<2x8x32xf32>
    %28 = vector.extract_strided_slice %25 {offsets = [0, 0, 64], sizes = [2, 8, 32], strides = [1, 1, 1]} : vector<2x8x96xf32> to vector<2x8x32xf32>
    %29 = vector.extract_strided_slice %26 {offsets = [0, 0, 0], sizes = [2, 8, 8], strides = [1, 1, 1]} : vector<2x8x32xf32> to vector<2x8x8xf32>
    %30 = vector.extract_strided_slice %27 {offsets = [0, 0, 0], sizes = [2, 8, 8], strides = [1, 1, 1]} : vector<2x8x32xf32> to vector<2x8x8xf32>
    %31 = vector.extract_strided_slice %28 {offsets = [0, 0, 0], sizes = [2, 8, 8], strides = [1, 1, 1]} : vector<2x8x32xf32> to vector<2x8x8xf32>
    "tpu.trace_start"() <{level = 10 : i32, message = "bqd,bkd->bqk"}> : () -> ()
    %cst_19 = arith.constant dense<0.000000e+00> : vector<2x8x8xf32>
    %32 = tpu.matmul %29, %30, %cst_19 {dimension_numbers = #tpu.dot_dimension_numbers<[2], [2], [1], [1], [0, 0, 0, 1, 1, 1], [0], [0]>} : vector<2x8x8xf32>, vector<2x8x8xf32>, vector<2x8x8xf32> -> vector<2x8x8xf32>
    "tpu.trace_stop"() : () -> ()
    %cst_20 = arith.constant 0.353553385 : f32
    %33 = vector.broadcast %cst_20 : f32 to vector<2x8x8xf32>
    %34 = arith.mulf %32, %33 : vector<2x8x8xf32>
    %cst_21 = arith.constant dense<0xFF800000> : vector<2x8xf32>
    %35 = vector.multi_reduction <maximumf>, %34, %cst_21 [2] : vector<2x8x8xf32> to vector<2x8xf32>
    %36 = vector.shape_cast %35 : vector<2x8xf32> to vector<2x8x1xf32>
    %37 = vector.broadcast %36 : vector<2x8x1xf32> to vector<2x8x8xf32>
    %38 = arith.subf %34, %37 : vector<2x8x8xf32>
    %39 = math.exp %38 : vector<2x8x8xf32>
    %cst_22 = arith.constant dense<0.000000e+00> : vector<2x8xf32>
    %40 = vector.multi_reduction <add>, %39, %cst_22 [2] : vector<2x8x8xf32> to vector<2x8xf32>
    %41 = vector.shape_cast %40 : vector<2x8xf32> to vector<2x8x1xf32>
    %42 = tpu.reciprocal %41 {approx = true} : vector<2x8x1xf32> -> vector<2x8x1xf32>
    %43 = vector.broadcast %42 : vector<2x8x1xf32> to vector<2x8x8xf32>
    %44 = arith.mulf %39, %43 : vector<2x8x8xf32>
    "tpu.trace_start"() <{level = 10 : i32, message = "bqk,bkd->bqd"}> : () -> ()
    %cst_23 = arith.constant dense<0.000000e+00> : vector<2x8x8xf32>
    %45 = tpu.matmul %44, %31, %cst_23 {dimension_numbers = #tpu.dot_dimension_numbers<[2], [1], [1], [2], [0, 0, 0, 1, 1, 2], [0], [0]>} : vector<2x8x8xf32>, vector<2x8x8xf32>, vector<2x8x8xf32> -> vector<2x8x8xf32>
    "tpu.trace_stop"() : () -> ()
    %c0_24 = arith.constant 0 : index
    %c480 = arith.constant 480 : index
    %46 = vector.load %arg3[%c0_24, %c480] : memref<32x544xf32, #tpu.memory_space<vmem>>, vector<8x32xf32>
    %47 = vector.shape_cast %45 : vector<2x8x8xf32> to vector<16x8xf32>
    %cst_25 = arith.constant dense<0.000000e+00> : vector<16x32xf32>
    %48 = tpu.matmul %47, %46, %cst_25 {dimension_numbers = #tpu.dot_dimension_numbers<[1], [0], [0], [1], [0, 0, 1, 1], [], []>} : vector<16x8xf32>, vector<8x32xf32>, vector<16x32xf32> -> vector<16x32xf32>
    %49 = vector.extract_strided_slice %26 {offsets = [0, 0, 8], sizes = [2, 8, 8], strides = [1, 1, 1]} : vector<2x8x32xf32> to vector<2x8x8xf32>
    %50 = vector.extract_strided_slice %27 {offsets = [0, 0, 8], sizes = [2, 8, 8], strides = [1, 1, 1]} : vector<2x8x32xf32> to vector<2x8x8xf32>
    %51 = vector.extract_strided_slice %28 {offsets = [0, 0, 8], sizes = [2, 8, 8], strides = [1, 1, 1]} : vector<2x8x32xf32> to vector<2x8x8xf32>
    "tpu.trace_start"() <{level = 10 : i32, message = "bqd,bkd->bqk"}> : () -> ()
    %cst_26 = arith.constant dense<0.000000e+00> : vector<2x8x8xf32>
    %52 = tpu.matmul %49, %50, %cst_26 {dimension_numbers = #tpu.dot_dimension_numbers<[2], [2], [1], [1], [0, 0, 0, 1, 1, 1], [0], [0]>} : vector<2x8x8xf32>, vector<2x8x8xf32>, vector<2x8x8xf32> -> vector<2x8x8xf32>
    "tpu.trace_stop"() : () -> ()
    %cst_27 = arith.constant 0.353553385 : f32
    %53 = vector.broadcast %cst_27 : f32 to vector<2x8x8xf32>
    %54 = arith.mulf %52, %53 : vector<2x8x8xf32>
    %cst_28 = arith.constant dense<0xFF800000> : vector<2x8xf32>
    %55 = vector.multi_reduction <maximumf>, %54, %cst_28 [2] : vector<2x8x8xf32> to vector<2x8xf32>
    %56 = vector.shape_cast %55 : vector<2x8xf32> to vector<2x8x1xf32>
    %57 = vector.broadcast %56 : vector<2x8x1xf32> to vector<2x8x8xf32>
    %58 = arith.subf %54, %57 : vector<2x8x8xf32>
    %59 = math.exp %58 : vector<2x8x8xf32>
    %cst_29 = arith.constant dense<0.000000e+00> : vector<2x8xf32>
    %60 = vector.multi_reduction <add>, %59, %cst_29 [2] : vector<2x8x8xf32> to vector<2x8xf32>
    %61 = vector.shape_cast %60 : vector<2x8xf32> to vector<2x8x1xf32>
    %62 = tpu.reciprocal %61 {approx = true} : vector<2x8x1xf32> -> vector<2x8x1xf32>
    %63 = vector.broadcast %62 : vector<2x8x1xf32> to vector<2x8x8xf32>
    %64 = arith.mulf %59, %63 : vector<2x8x8xf32>
    "tpu.trace_start"() <{level = 10 : i32, message = "bqk,bkd->bqd"}> : () -> ()
    %cst_30 = arith.constant dense<0.000000e+00> : vector<2x8x8xf32>
    %65 = tpu.matmul %64, %51, %cst_30 {dimension_numbers = #tpu.dot_dimension_numbers<[2], [1], [1], [2], [0, 0, 0, 1, 1, 2], [0], [0]>} : vector<2x8x8xf32>, vector<2x8x8xf32>, vector<2x8x8xf32> -> vector<2x8x8xf32>
    "tpu.trace_stop"() : () -> ()
    %c8 = arith.constant 8 : index
    %c480_31 = arith.constant 480 : index
    %66 = vector.load %arg3[%c8, %c480_31] : memref<32x544xf32, #tpu.memory_space<vmem>>, vector<8x32xf32>
    %67 = vector.shape_cast %65 : vector<2x8x8xf32> to vector<16x8xf32>
    %cst_32 = arith.constant dense<0.000000e+00> : vector<16x32xf32>
    %68 = tpu.matmul %67, %66, %cst_32 {dimension_numbers = #tpu.dot_dimension_numbers<[1], [0], [0], [1], [0, 0, 1, 1], [], []>} : vector<16x8xf32>, vector<8x32xf32>, vector<16x32xf32> -> vector<16x32xf32>
    %69 = arith.addf %48, %68 : vector<16x32xf32>
    %70 = vector.extract_strided_slice %26 {offsets = [0, 0, 16], sizes = [2, 8, 8], strides = [1, 1, 1]} : vector<2x8x32xf32> to vector<2x8x8xf32>
    %71 = vector.extract_strided_slice %27 {offsets = [0, 0, 16], sizes = [2, 8, 8], strides = [1, 1, 1]} : vector<2x8x32xf32> to vector<2x8x8xf32>
    %72 = vector.extract_strided_slice %28 {offsets = [0, 0, 16], sizes = [2, 8, 8], strides = [1, 1, 1]} : vector<2x8x32xf32> to vector<2x8x8xf32>
    "tpu.trace_start"() <{level = 10 : i32, message = "bqd,bkd->bqk"}> : () -> ()
    %cst_33 = arith.constant dense<0.000000e+00> : vector<2x8x8xf32>
    %73 = tpu.matmul %70, %71, %cst_33 {dimension_numbers = #tpu.dot_dimension_numbers<[2], [2], [1], [1], [0, 0, 0, 1, 1, 1], [0], [0]>} : vector<2x8x8xf32>, vector<2x8x8xf32>, vector<2x8x8xf32> -> vector<2x8x8xf32>
    "tpu.trace_stop"() : () -> ()
    %cst_34 = arith.constant 0.353553385 : f32
    %74 = vector.broadcast %cst_34 : f32 to vector<2x8x8xf32>
    %75 = arith.mulf %73, %74 : vector<2x8x8xf32>
    %cst_35 = arith.constant dense<0xFF800000> : vector<2x8xf32>
    %76 = vector.multi_reduction <maximumf>, %75, %cst_35 [2] : vector<2x8x8xf32> to vector<2x8xf32>
    %77 = vector.shape_cast %76 : vector<2x8xf32> to vector<2x8x1xf32>
    %78 = vector.broadcast %77 : vector<2x8x1xf32> to vector<2x8x8xf32>
    %79 = arith.subf %75, %78 : vector<2x8x8xf32>
    %80 = math.exp %79 : vector<2x8x8xf32>
    %cst_36 = arith.constant dense<0.000000e+00> : vector<2x8xf32>
    %81 = vector.multi_reduction <add>, %80, %cst_36 [2] : vector<2x8x8xf32> to vector<2x8xf32>
    %82 = vector.shape_cast %81 : vector<2x8xf32> to vector<2x8x1xf32>
    %83 = tpu.reciprocal %82 {approx = true} : vector<2x8x1xf32> -> vector<2x8x1xf32>
    %84 = vector.broadcast %83 : vector<2x8x1xf32> to vector<2x8x8xf32>
    %85 = arith.mulf %80, %84 : vector<2x8x8xf32>
    "tpu.trace_start"() <{level = 10 : i32, message = "bqk,bkd->bqd"}> : () -> ()
    %cst_37 = arith.constant dense<0.000000e+00> : vector<2x8x8xf32>
    %86 = tpu.matmul %85, %72, %cst_37 {dimension_numbers = #tpu.dot_dimension_numbers<[2], [1], [1], [2], [0, 0, 0, 1, 1, 2], [0], [0]>} : vector<2x8x8xf32>, vector<2x8x8xf32>, vector<2x8x8xf32> -> vector<2x8x8xf32>
    "tpu.trace_stop"() : () -> ()
    %c16_38 = arith.constant 16 : index
    %c480_39 = arith.constant 480 : index
    %87 = vector.load %arg3[%c16_38, %c480_39] : memref<32x544xf32, #tpu.memory_space<vmem>>, vector<8x32xf32>
    %88 = vector.shape_cast %86 : vector<2x8x8xf32> to vector<16x8xf32>
    %cst_40 = arith.constant dense<0.000000e+00> : vector<16x32xf32>
    %89 = tpu.matmul %88, %87, %cst_40 {dimension_numbers = #tpu.dot_dimension_numbers<[1], [0], [0], [1], [0, 0, 1, 1], [], []>} : vector<16x8xf32>, vector<8x32xf32>, vector<16x32xf32> -> vector<16x32xf32>
    %90 = arith.addf %69, %89 : vector<16x32xf32>
    %91 = vector.extract_strided_slice %26 {offsets = [0, 0, 24], sizes = [2, 8, 8], strides = [1, 1, 1]} : vector<2x8x32xf32> to vector<2x8x8xf32>
    %92 = vector.extract_strided_slice %27 {offsets = [0, 0, 24], sizes = [2, 8, 8], strides = [1, 1, 1]} : vector<2x8x32xf32> to vector<2x8x8xf32>
    %93 = vector.extract_strided_slice %28 {offsets = [0, 0, 24], sizes = [2, 8, 8], strides = [1, 1, 1]} : vector<2x8x32xf32> to vector<2x8x8xf32>
    "tpu.trace_start"() <{level = 10 : i32, message = "bqd,bkd->bqk"}> : () -> ()
    %cst_41 = arith.constant dense<0.000000e+00> : vector<2x8x8xf32>
    %94 = tpu.matmul %91, %92, %cst_41 {dimension_numbers = #tpu.dot_dimension_numbers<[2], [2], [1], [1], [0, 0, 0, 1, 1, 1], [0], [0]>} : vector<2x8x8xf32>, vector<2x8x8xf32>, vector<2x8x8xf32> -> vector<2x8x8xf32>
    "tpu.trace_stop"() : () -> ()
    %cst_42 = arith.constant 0.353553385 : f32
    %95 = vector.broadcast %cst_42 : f32 to vector<2x8x8xf32>
    %96 = arith.mulf %94, %95 : vector<2x8x8xf32>
    %cst_43 = arith.constant dense<0xFF800000> : vector<2x8xf32>
    %97 = vector.multi_reduction <maximumf>, %96, %cst_43 [2] : vector<2x8x8xf32> to vector<2x8xf32>
    %98 = vector.shape_cast %97 : vector<2x8xf32> to vector<2x8x1xf32>
    %99 = vector.broadcast %98 : vector<2x8x1xf32> to vector<2x8x8xf32>
    %100 = arith.subf %96, %99 : vector<2x8x8xf32>
    %101 = math.exp %100 : vector<2x8x8xf32>
    %cst_44 = arith.constant dense<0.000000e+00> : vector<2x8xf32>
    %102 = vector.multi_reduction <add>, %101, %cst_44 [2] : vector<2x8x8xf32> to vector<2x8xf32>
    %103 = vector.shape_cast %102 : vector<2x8xf32> to vector<2x8x1xf32>
    %104 = tpu.reciprocal %103 {approx = true} : vector<2x8x1xf32> -> vector<2x8x1xf32>
    %105 = vector.broadcast %104 : vector<2x8x1xf32> to vector<2x8x8xf32>
    %106 = arith.mulf %101, %105 : vector<2x8x8xf32>
    "tpu.trace_start"() <{level = 10 : i32, message = "bqk,bkd->bqd"}> : () -> ()
    %cst_45 = arith.constant dense<0.000000e+00> : vector<2x8x8xf32>
    %107 = tpu.matmul %106, %93, %cst_45 {dimension_numbers = #tpu.dot_dimension_numbers<[2], [1], [1], [2], [0, 0, 0, 1, 1, 2], [0], [0]>} : vector<2x8x8xf32>, vector<2x8x8xf32>, vector<2x8x8xf32> -> vector<2x8x8xf32>
    "tpu.trace_stop"() : () -> ()
    %c24 = arith.constant 24 : index
    %c480_46 = arith.constant 480 : index
    %108 = vector.load %arg3[%c24, %c480_46] : memref<32x544xf32, #tpu.memory_space<vmem>>, vector<8x32xf32>
    %109 = vector.shape_cast %107 : vector<2x8x8xf32> to vector<16x8xf32>
    %cst_47 = arith.constant dense<0.000000e+00> : vector<16x32xf32>
    %110 = tpu.matmul %109, %108, %cst_47 {dimension_numbers = #tpu.dot_dimension_numbers<[1], [0], [0], [1], [0, 0, 1, 1], [], []>} : vector<16x8xf32>, vector<8x32xf32>, vector<16x32xf32> -> vector<16x32xf32>
    %111 = arith.addf %90, %110 : vector<16x32xf32>
    %c2 = arith.constant 2 : index
    %c0_48 = arith.constant 0 : index
    %112 = vector.load %arg5[%c2, %c0_48] : memref<24x128xf32, #tpu.memory_space<vmem>>, vector<1x32xf32>
    %113 = vector.broadcast %112 : vector<1x32xf32> to vector<16x32xf32>
    %114 = arith.addf %111, %113 : vector<16x32xf32>
    %115 = arith.addf %114, %19 : vector<16x32xf32>
    %cst_49 = arith.constant dense<0.000000e+00> : vector<16xf32>
    %116 = vector.multi_reduction <add>, %115, %cst_49 [1] : vector<16x32xf32> to vector<16xf32>
    %117 = vector.shape_cast %116 : vector<16xf32> to vector<16x1xf32>
    %cst_50 = arith.constant 3.200000e+01 : f32
    %118 = vector.broadcast %cst_50 : f32 to vector<16x1xf32>
    %119 = arith.divf %117, %118 : vector<16x1xf32>
    %120 = vector.broadcast %119 : vector<16x1xf32> to vector<16x32xf32>
    %121 = arith.subf %115, %120 : vector<16x32xf32>
    %122 = arith.mulf %121, %121 : vector<16x32xf32>
    %cst_51 = arith.constant dense<0.000000e+00> : vector<16xf32>
    %123 = vector.multi_reduction <add>, %122, %cst_51 [1] : vector<16x32xf32> to vector<16xf32>
    %124 = vector.shape_cast %123 : vector<16xf32> to vector<16x1xf32>
    %cst_52 = arith.constant 3.200000e+01 : f32
    %125 = vector.broadcast %cst_52 : f32 to vector<16x1xf32>
    %126 = arith.divf %124, %125 : vector<16x1xf32>
    %cst_53 = arith.constant 9.99999996E-13 : f32
    %127 = vector.broadcast %cst_53 : f32 to vector<16x1xf32>
    %128 = arith.addf %126, %127 : vector<16x1xf32>
    %129 = math.rsqrt %128 : vector<16x1xf32>
    %130 = vector.broadcast %129 : vector<16x1xf32> to vector<16x32xf32>
    %131 = arith.mulf %121, %130 : vector<16x32xf32>
    %c3 = arith.constant 3 : index
    %c0_54 = arith.constant 0 : index
    %132 = vector.load %arg5[%c3, %c0_54] : memref<24x128xf32, #tpu.memory_space<vmem>>, vector<1x32xf32>
    %133 = vector.broadcast %132 : vector<1x32xf32> to vector<16x32xf32>
    %134 = arith.mulf %131, %133 : vector<16x32xf32>
    %c4 = arith.constant 4 : index
    %c0_55 = arith.constant 0 : index
    %135 = vector.load %arg5[%c4, %c0_55] : memref<24x128xf32, #tpu.memory_space<vmem>>, vector<1x32xf32>
    %136 = vector.broadcast %135 : vector<1x32xf32> to vector<16x32xf32>
    %137 = arith.addf %134, %136 : vector<16x32xf32>
    %c0_56 = arith.constant 0 : index
    %c448 = arith.constant 448 : index
    %138 = vector.load %arg3[%c0_56, %c448] : memref<32x544xf32, #tpu.memory_space<vmem>>, vector<32x32xf32>
    %cst_57 = arith.constant dense<0.000000e+00> : vector<16x32xf32>
    %139 = tpu.matmul %137, %138, %cst_57 {dimension_numbers = #tpu.dot_dimension_numbers<[1], [0], [0], [1], [0, 0, 1, 1], [], []>} : vector<16x32xf32>, vector<32x32xf32>, vector<16x32xf32> -> vector<16x32xf32>
    %c5 = arith.constant 5 : index
    %c0_58 = arith.constant 0 : index
    %140 = vector.load %arg5[%c5, %c0_58] : memref<24x128xf32, #tpu.memory_space<vmem>>, vector<1x32xf32>
    %141 = vector.broadcast %140 : vector<1x32xf32> to vector<16x32xf32>
    %142 = arith.addf %139, %141 : vector<16x32xf32>
    %143 = vector.shape_cast %142 : vector<16x32xf32> to vector<2x8x32xf32>
    %c0_59 = arith.constant 0 : index
    %c0_60 = arith.constant 0 : index
    %c0_61 = arith.constant 0 : index
    %144 = vector.load %arg0[%c0_59, %c0_60, %c0_61] : memref<2x32x32xf32, #tpu.memory_space<vmem>>, vector<2x32x32xf32>
    %145 = vector.shape_cast %144 : vector<2x32x32xf32> to vector<64x32xf32>
    %c0_62 = arith.constant 0 : index
    %c256 = arith.constant 256 : index
    %146 = vector.load %arg3[%c0_62, %c256] : memref<32x544xf32, #tpu.memory_space<vmem>>, vector<32x64xf32>
    %cst_63 = arith.constant dense<0.000000e+00> : vector<64x64xf32>
    %147 = tpu.matmul %145, %146, %cst_63 {dimension_numbers = #tpu.dot_dimension_numbers<[1], [0], [0], [1], [0, 0, 1, 1], [], []>} : vector<64x32xf32>, vector<32x64xf32>, vector<64x64xf32> -> vector<64x64xf32>
    %c6 = arith.constant 6 : index
    %c0_64 = arith.constant 0 : index
    %148 = vector.load %arg5[%c6, %c0_64] : memref<24x128xf32, #tpu.memory_space<vmem>>, vector<1x64xf32>
    %149 = vector.broadcast %148 : vector<1x64xf32> to vector<64x64xf32>
    %150 = arith.addf %147, %149 : vector<64x64xf32>
    %151 = vector.shape_cast %150 : vector<64x64xf32> to vector<2x32x64xf32>
    %152 = vector.extract_strided_slice %151 {offsets = [0, 0, 0], sizes = [2, 32, 32], strides = [1, 1, 1]} : vector<2x32x64xf32> to vector<2x32x32xf32>
    %153 = vector.extract_strided_slice %151 {offsets = [0, 0, 32], sizes = [2, 32, 32], strides = [1, 1, 1]} : vector<2x32x64xf32> to vector<2x32x32xf32>
    %154 = vector.extract_strided_slice %143 {offsets = [0, 0, 0], sizes = [2, 8, 8], strides = [1, 1, 1]} : vector<2x8x32xf32> to vector<2x8x8xf32>
    %155 = vector.extract_strided_slice %152 {offsets = [0, 0, 0], sizes = [2, 32, 8], strides = [1, 1, 1]} : vector<2x32x32xf32> to vector<2x32x8xf32>
    %156 = vector.extract_strided_slice %153 {offsets = [0, 0, 0], sizes = [2, 32, 8], strides = [1, 1, 1]} : vector<2x32x32xf32> to vector<2x32x8xf32>
    "tpu.trace_start"() <{level = 10 : i32, message = "bqd,bkd->bqk"}> : () -> ()
    %cst_65 = arith.constant dense<0.000000e+00> : vector<2x8x32xf32>
    %157 = tpu.matmul %154, %155, %cst_65 {dimension_numbers = #tpu.dot_dimension_numbers<[2], [2], [1], [1], [0, 0, 0, 1, 1, 1], [0], [0]>} : vector<2x8x8xf32>, vector<2x32x8xf32>, vector<2x8x32xf32> -> vector<2x8x32xf32>
    "tpu.trace_stop"() : () -> ()
    %cst_66 = arith.constant 0.353553385 : f32
    %158 = vector.broadcast %cst_66 : f32 to vector<2x8x32xf32>
    %159 = arith.mulf %157, %158 : vector<2x8x32xf32>
    %cst_67 = arith.constant dense<0xFF800000> : vector<2x8xf32>
    %160 = vector.multi_reduction <maximumf>, %159, %cst_67 [2] : vector<2x8x32xf32> to vector<2x8xf32>
    %161 = vector.shape_cast %160 : vector<2x8xf32> to vector<2x8x1xf32>
    %162 = vector.broadcast %161 : vector<2x8x1xf32> to vector<2x8x32xf32>
    %163 = arith.subf %159, %162 : vector<2x8x32xf32>
    %164 = math.exp %163 : vector<2x8x32xf32>
    %cst_68 = arith.constant dense<0.000000e+00> : vector<2x8xf32>
    %165 = vector.multi_reduction <add>, %164, %cst_68 [2] : vector<2x8x32xf32> to vector<2x8xf32>
    %166 = vector.shape_cast %165 : vector<2x8xf32> to vector<2x8x1xf32>
    %167 = tpu.reciprocal %166 {approx = true} : vector<2x8x1xf32> -> vector<2x8x1xf32>
    %168 = vector.broadcast %167 : vector<2x8x1xf32> to vector<2x8x32xf32>
    %169 = arith.mulf %164, %168 : vector<2x8x32xf32>
    "tpu.trace_start"() <{level = 10 : i32, message = "bqk,bkd->bqd"}> : () -> ()
    %cst_69 = arith.constant dense<0.000000e+00> : vector<2x8x8xf32>
    %170 = tpu.matmul %169, %156, %cst_69 {dimension_numbers = #tpu.dot_dimension_numbers<[2], [1], [1], [2], [0, 0, 0, 1, 1, 2], [0], [0]>} : vector<2x8x32xf32>, vector<2x32x8xf32>, vector<2x8x8xf32> -> vector<2x8x8xf32>
    "tpu.trace_stop"() : () -> ()
    %c0_70 = arith.constant 0 : index
    %c512 = arith.constant 512 : index
    %171 = vector.load %arg3[%c0_70, %c512] : memref<32x544xf32, #tpu.memory_space<vmem>>, vector<8x32xf32>
    %172 = vector.shape_cast %170 : vector<2x8x8xf32> to vector<16x8xf32>
    %cst_71 = arith.constant dense<0.000000e+00> : vector<16x32xf32>
    %173 = tpu.matmul %172, %171, %cst_71 {dimension_numbers = #tpu.dot_dimension_numbers<[1], [0], [0], [1], [0, 0, 1, 1], [], []>} : vector<16x8xf32>, vector<8x32xf32>, vector<16x32xf32> -> vector<16x32xf32>
    %174 = vector.extract_strided_slice %143 {offsets = [0, 0, 8], sizes = [2, 8, 8], strides = [1, 1, 1]} : vector<2x8x32xf32> to vector<2x8x8xf32>
    %175 = vector.extract_strided_slice %152 {offsets = [0, 0, 8], sizes = [2, 32, 8], strides = [1, 1, 1]} : vector<2x32x32xf32> to vector<2x32x8xf32>
    %176 = vector.extract_strided_slice %153 {offsets = [0, 0, 8], sizes = [2, 32, 8], strides = [1, 1, 1]} : vector<2x32x32xf32> to vector<2x32x8xf32>
    "tpu.trace_start"() <{level = 10 : i32, message = "bqd,bkd->bqk"}> : () -> ()
    %cst_72 = arith.constant dense<0.000000e+00> : vector<2x8x32xf32>
    %177 = tpu.matmul %174, %175, %cst_72 {dimension_numbers = #tpu.dot_dimension_numbers<[2], [2], [1], [1], [0, 0, 0, 1, 1, 1], [0], [0]>} : vector<2x8x8xf32>, vector<2x32x8xf32>, vector<2x8x32xf32> -> vector<2x8x32xf32>
    "tpu.trace_stop"() : () -> ()
    %cst_73 = arith.constant 0.353553385 : f32
    %178 = vector.broadcast %cst_73 : f32 to vector<2x8x32xf32>
    %179 = arith.mulf %177, %178 : vector<2x8x32xf32>
    %cst_74 = arith.constant dense<0xFF800000> : vector<2x8xf32>
    %180 = vector.multi_reduction <maximumf>, %179, %cst_74 [2] : vector<2x8x32xf32> to vector<2x8xf32>
    %181 = vector.shape_cast %180 : vector<2x8xf32> to vector<2x8x1xf32>
    %182 = vector.broadcast %181 : vector<2x8x1xf32> to vector<2x8x32xf32>
    %183 = arith.subf %179, %182 : vector<2x8x32xf32>
    %184 = math.exp %183 : vector<2x8x32xf32>
    %cst_75 = arith.constant dense<0.000000e+00> : vector<2x8xf32>
    %185 = vector.multi_reduction <add>, %184, %cst_75 [2] : vector<2x8x32xf32> to vector<2x8xf32>
    %186 = vector.shape_cast %185 : vector<2x8xf32> to vector<2x8x1xf32>
    %187 = tpu.reciprocal %186 {approx = true} : vector<2x8x1xf32> -> vector<2x8x1xf32>
    %188 = vector.broadcast %187 : vector<2x8x1xf32> to vector<2x8x32xf32>
    %189 = arith.mulf %184, %188 : vector<2x8x32xf32>
    "tpu.trace_start"() <{level = 10 : i32, message = "bqk,bkd->bqd"}> : () -> ()
    %cst_76 = arith.constant dense<0.000000e+00> : vector<2x8x8xf32>
    %190 = tpu.matmul %189, %176, %cst_76 {dimension_numbers = #tpu.dot_dimension_numbers<[2], [1], [1], [2], [0, 0, 0, 1, 1, 2], [0], [0]>} : vector<2x8x32xf32>, vector<2x32x8xf32>, vector<2x8x8xf32> -> vector<2x8x8xf32>
    "tpu.trace_stop"() : () -> ()
    %c8_77 = arith.constant 8 : index
    %c512_78 = arith.constant 512 : index
    %191 = vector.load %arg3[%c8_77, %c512_78] : memref<32x544xf32, #tpu.memory_space<vmem>>, vector<8x32xf32>
    %192 = vector.shape_cast %190 : vector<2x8x8xf32> to vector<16x8xf32>
    %cst_79 = arith.constant dense<0.000000e+00> : vector<16x32xf32>
    %193 = tpu.matmul %192, %191, %cst_79 {dimension_numbers = #tpu.dot_dimension_numbers<[1], [0], [0], [1], [0, 0, 1, 1], [], []>} : vector<16x8xf32>, vector<8x32xf32>, vector<16x32xf32> -> vector<16x32xf32>
    %194 = arith.addf %173, %193 : vector<16x32xf32>
    %195 = vector.extract_strided_slice %143 {offsets = [0, 0, 16], sizes = [2, 8, 8], strides = [1, 1, 1]} : vector<2x8x32xf32> to vector<2x8x8xf32>
    %196 = vector.extract_strided_slice %152 {offsets = [0, 0, 16], sizes = [2, 32, 8], strides = [1, 1, 1]} : vector<2x32x32xf32> to vector<2x32x8xf32>
    %197 = vector.extract_strided_slice %153 {offsets = [0, 0, 16], sizes = [2, 32, 8], strides = [1, 1, 1]} : vector<2x32x32xf32> to vector<2x32x8xf32>
    "tpu.trace_start"() <{level = 10 : i32, message = "bqd,bkd->bqk"}> : () -> ()
    %cst_80 = arith.constant dense<0.000000e+00> : vector<2x8x32xf32>
    %198 = tpu.matmul %195, %196, %cst_80 {dimension_numbers = #tpu.dot_dimension_numbers<[2], [2], [1], [1], [0, 0, 0, 1, 1, 1], [0], [0]>} : vector<2x8x8xf32>, vector<2x32x8xf32>, vector<2x8x32xf32> -> vector<2x8x32xf32>
    "tpu.trace_stop"() : () -> ()
    %cst_81 = arith.constant 0.353553385 : f32
    %199 = vector.broadcast %cst_81 : f32 to vector<2x8x32xf32>
    %200 = arith.mulf %198, %199 : vector<2x8x32xf32>
    %cst_82 = arith.constant dense<0xFF800000> : vector<2x8xf32>
    %201 = vector.multi_reduction <maximumf>, %200, %cst_82 [2] : vector<2x8x32xf32> to vector<2x8xf32>
    %202 = vector.shape_cast %201 : vector<2x8xf32> to vector<2x8x1xf32>
    %203 = vector.broadcast %202 : vector<2x8x1xf32> to vector<2x8x32xf32>
    %204 = arith.subf %200, %203 : vector<2x8x32xf32>
    %205 = math.exp %204 : vector<2x8x32xf32>
    %cst_83 = arith.constant dense<0.000000e+00> : vector<2x8xf32>
    %206 = vector.multi_reduction <add>, %205, %cst_83 [2] : vector<2x8x32xf32> to vector<2x8xf32>
    %207 = vector.shape_cast %206 : vector<2x8xf32> to vector<2x8x1xf32>
    %208 = tpu.reciprocal %207 {approx = true} : vector<2x8x1xf32> -> vector<2x8x1xf32>
    %209 = vector.broadcast %208 : vector<2x8x1xf32> to vector<2x8x32xf32>
    %210 = arith.mulf %205, %209 : vector<2x8x32xf32>
    "tpu.trace_start"() <{level = 10 : i32, message = "bqk,bkd->bqd"}> : () -> ()
    %cst_84 = arith.constant dense<0.000000e+00> : vector<2x8x8xf32>
    %211 = tpu.matmul %210, %197, %cst_84 {dimension_numbers = #tpu.dot_dimension_numbers<[2], [1], [1], [2], [0, 0, 0, 1, 1, 2], [0], [0]>} : vector<2x8x32xf32>, vector<2x32x8xf32>, vector<2x8x8xf32> -> vector<2x8x8xf32>
    "tpu.trace_stop"() : () -> ()
    %c16_85 = arith.constant 16 : index
    %c512_86 = arith.constant 512 : index
    %212 = vector.load %arg3[%c16_85, %c512_86] : memref<32x544xf32, #tpu.memory_space<vmem>>, vector<8x32xf32>
    %213 = vector.shape_cast %211 : vector<2x8x8xf32> to vector<16x8xf32>
    %cst_87 = arith.constant dense<0.000000e+00> : vector<16x32xf32>
    %214 = tpu.matmul %213, %212, %cst_87 {dimension_numbers = #tpu.dot_dimension_numbers<[1], [0], [0], [1], [0, 0, 1, 1], [], []>} : vector<16x8xf32>, vector<8x32xf32>, vector<16x32xf32> -> vector<16x32xf32>
    %215 = arith.addf %194, %214 : vector<16x32xf32>
    %216 = vector.extract_strided_slice %143 {offsets = [0, 0, 24], sizes = [2, 8, 8], strides = [1, 1, 1]} : vector<2x8x32xf32> to vector<2x8x8xf32>
    %217 = vector.extract_strided_slice %152 {offsets = [0, 0, 24], sizes = [2, 32, 8], strides = [1, 1, 1]} : vector<2x32x32xf32> to vector<2x32x8xf32>
    %218 = vector.extract_strided_slice %153 {offsets = [0, 0, 24], sizes = [2, 32, 8], strides = [1, 1, 1]} : vector<2x32x32xf32> to vector<2x32x8xf32>
    "tpu.trace_start"() <{level = 10 : i32, message = "bqd,bkd->bqk"}> : () -> ()
    %cst_88 = arith.constant dense<0.000000e+00> : vector<2x8x32xf32>
    %219 = tpu.matmul %216, %217, %cst_88 {dimension_numbers = #tpu.dot_dimension_numbers<[2], [2], [1], [1], [0, 0, 0, 1, 1, 1], [0], [0]>} : vector<2x8x8xf32>, vector<2x32x8xf32>, vector<2x8x32xf32> -> vector<2x8x32xf32>
    "tpu.trace_stop"() : () -> ()
    %cst_89 = arith.constant 0.353553385 : f32
    %220 = vector.broadcast %cst_89 : f32 to vector<2x8x32xf32>
    %221 = arith.mulf %219, %220 : vector<2x8x32xf32>
    %cst_90 = arith.constant dense<0xFF800000> : vector<2x8xf32>
    %222 = vector.multi_reduction <maximumf>, %221, %cst_90 [2] : vector<2x8x32xf32> to vector<2x8xf32>
    %223 = vector.shape_cast %222 : vector<2x8xf32> to vector<2x8x1xf32>
    %224 = vector.broadcast %223 : vector<2x8x1xf32> to vector<2x8x32xf32>
    %225 = arith.subf %221, %224 : vector<2x8x32xf32>
    %226 = math.exp %225 : vector<2x8x32xf32>
    %cst_91 = arith.constant dense<0.000000e+00> : vector<2x8xf32>
    %227 = vector.multi_reduction <add>, %226, %cst_91 [2] : vector<2x8x32xf32> to vector<2x8xf32>
    %228 = vector.shape_cast %227 : vector<2x8xf32> to vector<2x8x1xf32>
    %229 = tpu.reciprocal %228 {approx = true} : vector<2x8x1xf32> -> vector<2x8x1xf32>
    %230 = vector.broadcast %229 : vector<2x8x1xf32> to vector<2x8x32xf32>
    %231 = arith.mulf %226, %230 : vector<2x8x32xf32>
    "tpu.trace_start"() <{level = 10 : i32, message = "bqk,bkd->bqd"}> : () -> ()
    %cst_92 = arith.constant dense<0.000000e+00> : vector<2x8x8xf32>
    %232 = tpu.matmul %231, %218, %cst_92 {dimension_numbers = #tpu.dot_dimension_numbers<[2], [1], [1], [2], [0, 0, 0, 1, 1, 2], [0], [0]>} : vector<2x8x32xf32>, vector<2x32x8xf32>, vector<2x8x8xf32> -> vector<2x8x8xf32>
    "tpu.trace_stop"() : () -> ()
    %c24_93 = arith.constant 24 : index
    %c512_94 = arith.constant 512 : index
    %233 = vector.load %arg3[%c24_93, %c512_94] : memref<32x544xf32, #tpu.memory_space<vmem>>, vector<8x32xf32>
    %234 = vector.shape_cast %232 : vector<2x8x8xf32> to vector<16x8xf32>
    %cst_95 = arith.constant dense<0.000000e+00> : vector<16x32xf32>
    %235 = tpu.matmul %234, %233, %cst_95 {dimension_numbers = #tpu.dot_dimension_numbers<[1], [0], [0], [1], [0, 0, 1, 1], [], []>} : vector<16x8xf32>, vector<8x32xf32>, vector<16x32xf32> -> vector<16x32xf32>
    %236 = arith.addf %215, %235 : vector<16x32xf32>
    %c7 = arith.constant 7 : index
    %c0_96 = arith.constant 0 : index
    %237 = vector.load %arg5[%c7, %c0_96] : memref<24x128xf32, #tpu.memory_space<vmem>>, vector<1x32xf32>
    %238 = vector.broadcast %237 : vector<1x32xf32> to vector<16x32xf32>
    %239 = arith.addf %236, %238 : vector<16x32xf32>
    %240 = arith.addf %239, %137 : vector<16x32xf32>
    %cst_97 = arith.constant dense<0.000000e+00> : vector<16xf32>
    %241 = vector.multi_reduction <add>, %240, %cst_97 [1] : vector<16x32xf32> to vector<16xf32>
    %242 = vector.shape_cast %241 : vector<16xf32> to vector<16x1xf32>
    %cst_98 = arith.constant 3.200000e+01 : f32
    %243 = vector.broadcast %cst_98 : f32 to vector<16x1xf32>
    %244 = arith.divf %242, %243 : vector<16x1xf32>
    %245 = vector.broadcast %244 : vector<16x1xf32> to vector<16x32xf32>
    %246 = arith.subf %240, %245 : vector<16x32xf32>
    %247 = arith.mulf %246, %246 : vector<16x32xf32>
    %cst_99 = arith.constant dense<0.000000e+00> : vector<16xf32>
    %248 = vector.multi_reduction <add>, %247, %cst_99 [1] : vector<16x32xf32> to vector<16xf32>
    %249 = vector.shape_cast %248 : vector<16xf32> to vector<16x1xf32>
    %cst_100 = arith.constant 3.200000e+01 : f32
    %250 = vector.broadcast %cst_100 : f32 to vector<16x1xf32>
    %251 = arith.divf %249, %250 : vector<16x1xf32>
    %cst_101 = arith.constant 9.99999996E-13 : f32
    %252 = vector.broadcast %cst_101 : f32 to vector<16x1xf32>
    %253 = arith.addf %251, %252 : vector<16x1xf32>
    %254 = math.rsqrt %253 : vector<16x1xf32>
    %255 = vector.broadcast %254 : vector<16x1xf32> to vector<16x32xf32>
    %256 = arith.mulf %246, %255 : vector<16x32xf32>
    %c8_102 = arith.constant 8 : index
    %c0_103 = arith.constant 0 : index
    %257 = vector.load %arg5[%c8_102, %c0_103] : memref<24x128xf32, #tpu.memory_space<vmem>>, vector<1x32xf32>
    %258 = vector.broadcast %257 : vector<1x32xf32> to vector<16x32xf32>
    %259 = arith.mulf %256, %258 : vector<16x32xf32>
    %c9 = arith.constant 9 : index
    %c0_104 = arith.constant 0 : index
    %260 = vector.load %arg5[%c9, %c0_104] : memref<24x128xf32, #tpu.memory_space<vmem>>, vector<1x32xf32>
    %261 = vector.broadcast %260 : vector<1x32xf32> to vector<16x32xf32>
    %262 = arith.addf %259, %261 : vector<16x32xf32>
    %c0_105 = arith.constant 0 : index
    %c320 = arith.constant 320 : index
    %263 = vector.load %arg3[%c0_105, %c320] : memref<32x544xf32, #tpu.memory_space<vmem>>, vector<32x64xf32>
    %cst_106 = arith.constant dense<0.000000e+00> : vector<16x64xf32>
    %264 = tpu.matmul %262, %263, %cst_106 {dimension_numbers = #tpu.dot_dimension_numbers<[1], [0], [0], [1], [0, 0, 1, 1], [], []>} : vector<16x32xf32>, vector<32x64xf32>, vector<16x64xf32> -> vector<16x64xf32>
    %c10 = arith.constant 10 : index
    %c0_107 = arith.constant 0 : index
    %265 = vector.load %arg5[%c10, %c0_107] : memref<24x128xf32, #tpu.memory_space<vmem>>, vector<1x64xf32>
    %266 = vector.broadcast %265 : vector<1x64xf32> to vector<16x64xf32>
    %267 = arith.addf %264, %266 : vector<16x64xf32>
    %cst_108 = arith.constant 5.000000e-01 : f32
    %268 = vector.broadcast %cst_108 : f32 to vector<16x64xf32>
    %269 = arith.mulf %268, %267 : vector<16x64xf32>
    %cst_109 = arith.constant 0.707106769 : f32
    %270 = vector.broadcast %cst_109 : f32 to vector<16x64xf32>
    %271 = arith.mulf %267, %270 : vector<16x64xf32>
    %cst_110 = arith.constant 0.000000e+00 : f32
    %272 = vector.broadcast %cst_110 : f32 to vector<16x64xf32>
    %273 = arith.cmpf oge, %271, %272 : vector<16x64xf32>
    %cst_111 = arith.constant 1.000000e+00 : f32
    %cst_112 = arith.constant -1.000000e+00 : f32
    %274 = vector.broadcast %cst_111 : f32 to vector<16x64xf32>
    %275 = vector.broadcast %cst_112 : f32 to vector<16x64xf32>
    %276 = arith.select %273, %274, %275 : vector<16x64xi1>, vector<16x64xf32>
    %277 = math.absf %271 : vector<16x64xf32>
    %cst_113 = arith.constant 0.327591091 : f32
    %278 = vector.broadcast %cst_113 : f32 to vector<16x64xf32>
    %279 = arith.mulf %278, %277 : vector<16x64xf32>
    %cst_114 = arith.constant 1.000000e+00 : f32
    %280 = vector.broadcast %cst_114 : f32 to vector<16x64xf32>
    %281 = arith.addf %280, %279 : vector<16x64xf32>
    %cst_115 = arith.constant 1.000000e+00 : f32
    %282 = vector.broadcast %cst_115 : f32 to vector<16x64xf32>
    %283 = arith.divf %282, %281 : vector<16x64xf32>
    %cst_116 = arith.constant 1.06140542 : f32
    %284 = vector.broadcast %cst_116 : f32 to vector<16x64xf32>
    %285 = arith.mulf %284, %283 : vector<16x64xf32>
    %cst_117 = arith.constant -1.45315206 : f32
    %286 = vector.broadcast %cst_117 : f32 to vector<16x64xf32>
    %287 = arith.addf %285, %286 : vector<16x64xf32>
    %288 = arith.mulf %287, %283 : vector<16x64xf32>
    %cst_118 = arith.constant 1.42141378 : f32
    %289 = vector.broadcast %cst_118 : f32 to vector<16x64xf32>
    %290 = arith.addf %288, %289 : vector<16x64xf32>
    %291 = arith.mulf %290, %283 : vector<16x64xf32>
    %cst_119 = arith.constant -0.284496725 : f32
    %292 = vector.broadcast %cst_119 : f32 to vector<16x64xf32>
    %293 = arith.addf %291, %292 : vector<16x64xf32>
    %294 = arith.mulf %293, %283 : vector<16x64xf32>
    %cst_120 = arith.constant 0.254829586 : f32
    %295 = vector.broadcast %cst_120 : f32 to vector<16x64xf32>
    %296 = arith.addf %294, %295 : vector<16x64xf32>
    %297 = arith.mulf %296, %283 : vector<16x64xf32>
    %cst_121 = arith.constant 0.000000e+00 : f32
    %298 = vector.broadcast %cst_121 : f32 to vector<16x64xf32>
    %299 = arith.subf %298, %277 : vector<16x64xf32>
    %300 = arith.mulf %299, %277 : vector<16x64xf32>
    %301 = math.exp %300 : vector<16x64xf32>
    %302 = arith.mulf %297, %301 : vector<16x64xf32>
    %cst_122 = arith.constant 1.000000e+00 : f32
    %303 = vector.broadcast %cst_122 : f32 to vector<16x64xf32>
    %304 = arith.subf %303, %302 : vector<16x64xf32>
    %305 = arith.mulf %276, %304 : vector<16x64xf32>
    %cst_123 = arith.constant 1.000000e+00 : f32
    %306 = vector.broadcast %cst_123 : f32 to vector<16x64xf32>
    %307 = arith.addf %306, %305 : vector<16x64xf32>
    %308 = arith.mulf %269, %307 : vector<16x64xf32>
    %c0_124 = arith.constant 0 : index
    %c128_125 = arith.constant 128 : index
    %309 = vector.load %arg4[%c0_124, %c128_125] : memref<64x160xf32, #tpu.memory_space<vmem>>, vector<64x32xf32>
    %cst_126 = arith.constant dense<0.000000e+00> : vector<16x32xf32>
    %310 = tpu.matmul %308, %309, %cst_126 {dimension_numbers = #tpu.dot_dimension_numbers<[1], [0], [0], [1], [0, 0, 1, 1], [], []>} : vector<16x64xf32>, vector<64x32xf32>, vector<16x32xf32> -> vector<16x32xf32>
    %c11 = arith.constant 11 : index
    %c0_127 = arith.constant 0 : index
    %311 = vector.load %arg5[%c11, %c0_127] : memref<24x128xf32, #tpu.memory_space<vmem>>, vector<1x32xf32>
    %312 = vector.broadcast %311 : vector<1x32xf32> to vector<16x32xf32>
    %313 = arith.addf %310, %312 : vector<16x32xf32>
    %314 = arith.addf %313, %262 : vector<16x32xf32>
    %cst_128 = arith.constant dense<0.000000e+00> : vector<16xf32>
    %315 = vector.multi_reduction <add>, %314, %cst_128 [1] : vector<16x32xf32> to vector<16xf32>
    %316 = vector.shape_cast %315 : vector<16xf32> to vector<16x1xf32>
    %cst_129 = arith.constant 3.200000e+01 : f32
    %317 = vector.broadcast %cst_129 : f32 to vector<16x1xf32>
    %318 = arith.divf %316, %317 : vector<16x1xf32>
    %319 = vector.broadcast %318 : vector<16x1xf32> to vector<16x32xf32>
    %320 = arith.subf %314, %319 : vector<16x32xf32>
    %321 = arith.mulf %320, %320 : vector<16x32xf32>
    %cst_130 = arith.constant dense<0.000000e+00> : vector<16xf32>
    %322 = vector.multi_reduction <add>, %321, %cst_130 [1] : vector<16x32xf32> to vector<16xf32>
    %323 = vector.shape_cast %322 : vector<16xf32> to vector<16x1xf32>
    %cst_131 = arith.constant 3.200000e+01 : f32
    %324 = vector.broadcast %cst_131 : f32 to vector<16x1xf32>
    %325 = arith.divf %323, %324 : vector<16x1xf32>
    %cst_132 = arith.constant 9.99999996E-13 : f32
    %326 = vector.broadcast %cst_132 : f32 to vector<16x1xf32>
    %327 = arith.addf %325, %326 : vector<16x1xf32>
    %328 = math.rsqrt %327 : vector<16x1xf32>
    %329 = vector.broadcast %328 : vector<16x1xf32> to vector<16x32xf32>
    %330 = arith.mulf %320, %329 : vector<16x32xf32>
    %c12 = arith.constant 12 : index
    %c0_133 = arith.constant 0 : index
    %331 = vector.load %arg5[%c12, %c0_133] : memref<24x128xf32, #tpu.memory_space<vmem>>, vector<1x32xf32>
    %332 = vector.broadcast %331 : vector<1x32xf32> to vector<16x32xf32>
    %333 = arith.mulf %330, %332 : vector<16x32xf32>
    %c13 = arith.constant 13 : index
    %c0_134 = arith.constant 0 : index
    %334 = vector.load %arg5[%c13, %c0_134] : memref<24x128xf32, #tpu.memory_space<vmem>>, vector<1x32xf32>
    %335 = vector.broadcast %334 : vector<1x32xf32> to vector<16x32xf32>
    %336 = arith.addf %333, %335 : vector<16x32xf32>
    %c0_135 = arith.constant 0 : index
    %c0_136 = arith.constant 0 : index
    %337 = vector.load %arg3[%c0_135, %c0_136] : memref<32x544xf32, #tpu.memory_space<vmem>>, vector<32x128xf32>
    %cst_137 = arith.constant dense<0.000000e+00> : vector<16x128xf32>
    %338 = tpu.matmul %336, %337, %cst_137 {dimension_numbers = #tpu.dot_dimension_numbers<[1], [0], [0], [1], [0, 0, 1, 1], [], []>} : vector<16x32xf32>, vector<32x128xf32>, vector<16x128xf32> -> vector<16x128xf32>
    %c14 = arith.constant 14 : index
    %c0_138 = arith.constant 0 : index
    %339 = vector.load %arg5[%c14, %c0_138] : memref<24x128xf32, #tpu.memory_space<vmem>>, vector<1x128xf32>
    %340 = vector.broadcast %339 : vector<1x128xf32> to vector<16x128xf32>
    %341 = arith.addf %338, %340 : vector<16x128xf32>
    %c0_139 = arith.constant 0 : index
    %c0_140 = arith.constant 0 : index
    %342 = vector.load %arg7[%c0_139, %c0_140] : memref<16x128xf32, #tpu.memory_space<vmem>>, vector<16x128xf32>
    tpu.vector_store %arg7[%c0_139, %c0_140], %341 {strides = array<i32>} : memref<16x128xf32, #tpu.memory_space<vmem>>, vector<16x128xf32>,
    return
  }
}

</mosaic_0001>

<bundles_post_ra>
// kernel: preflmr_sampler_forward.1
= control target key start
LH: loop header
LB: loop body
LE: loop exit
PB: predicated region body
PF: predicated region fallthrough
CT: control target
= control target key end

     0   :  { %13 = vsyncpa [#allocation3], 0  ;;  %s5520_s24 = smov [#allocation2]   ;;  %s6356_s0 = inlined_call_operand.vmem [shape: f32[2,32,32], index: 0, kind: input, shape index: {}]   ;;  %s6357_s1 = inlined_call_operand.vmem [shape: f32[2,32], index: 1, kind: input, shape index: {}]   ;;  %s6358_s2 = inlined_call_operand.vmem [shape: f32[2,8,32], index: 2, kind: input, shape index: {}]   ;;  %s6359_s3 = inlined_call_operand.vmem [shape: f32[32,544], index: 3, kind: input, shape index: {}]   ;;  %s6360_s4 = inlined_call_operand.hbm [shape: f32[64,160], index: 4, kind: input, shape index: {}]   ;;  %s6361_s5 = inlined_call_operand.vmem [shape: f32[24,128], index: 5, kind: input, shape index: {}]   ;;  %s6362_s6 = inlined_call_operand.vmem [shape: f32[2,128], index: 6, kind: output, shape index: {0}]   ;;  %s6363_s7 = inlined_call_operand.vmem [shape: f32[16,128], index: 7, kind: output, shape index: {1}]  }
   0x1   :  { %s27_s25 = sshll.u32 %s5520_s24, 4  ;;  %s28_s25 = int_to_ptr.vmem [resolvable:$true] %s27_s25 }
   0x2   :  { %s5506_s26 = scalar_lea.vmem %s28_s25, 2048  ;;  %p5511_p1 = scmp.lt.s32.totalorder %s28_s25, %s28_s25 }
   0x3   :  { %p5507_p0 = scmp.ne.s32.totalorder %s28_s25, %s5506_s26  ;;  %p5512_p2 = scmp.lt.s32.totalorder %s5506_s26, %s5506_s26 }
   0x5   :  { %p5513_p3 = por %p5512_p2, %p5511_p1 }
   0x7   :  { %p5514_p4 = pnand %p5513_p3, %p5507_p0 }
   0x9   :  { %5517 = shalt.err (!%p5514_p4)
}
   0xa   :  { %s5521_s27 = smov 256   ;;  %s5522_s28 = smov 16  }
   0xb   :  { %33 = dma.hbm_to_vmem [thread:$0]  %s6360_s4, 2048, %s28_s25, [#allocation3], %s5521_s27, %s5521_s27, %s5522_s28  }
   0xc   :  { %5518 = dma.done.wait [#allocation3], 2048  }
   0xd   :  { %5519 = vsyncadd [#allocation3], 4294965248  ;;  %v5523_v0 = vmov 0.0   ;;  %vm5524_vm0 = vmmov 0   ;;  %v217_v1 = vld [vmem:[%s6359_s3 + $0x80] sm:$0xff]  ;;  %v215_v2 = vld [vmem:[%s6359_s3 + $0x30] sm:$0xff] }
   0xe   :  { %4974 = vmatprep.subr.mxu0 %v5523_v0  ;;  %4982 = vmatprep.mubr.msk.f32.mxu0 %vm5524_vm0, %v5523_v0  ;;  %s5525_s11 = smov 32   ;;  %v5598_v3 = vld [vmem:[%s6359_s3 + $0x90] sm:$0xff]  ;;  %v216_v4 = vld [vmem:[%s6359_s3 + $0x58] sm:$0xff]  ;;  %v214_v5 = vld [vmem:[%s6359_s3 + $0x8] sm:$0xff]  ;;  %vm49_vm1 = vcmask 261120   ;;  %vm137_vm2 = vcmask 523264  }
   0xf   :  { %4985 = vmatprep.subr.mxu1 %v5523_v0  ;;  %5001 = vmatprep.mubr.msk.f32.mxu1 %vm5524_vm0, %v5523_v0  ;;  %v5610_v6 = vld [vmem:[%s6359_s3 + $0x68] sm:$0xff]  ;;  %v5617_v7 = vld [vmem:[%s6359_s3 + $0x40] sm:$0xff]  ;;  %v5625_v8 = vld [vmem:[%s6359_s3 + $0x18] sm:$0xff]  ;;  %s5526_s15 = smov 96   ;;  %vm409_vm3 = vcmask 64512   ;;  %s5528_s16 = smov 88  }
  0x10   :  { %233 = vrot.lane.b32.xlu0 %v217_v1, %s5525_s11  ;;  %229 = vrot.lane.b32.xlu1 %v215_v2, %s5525_s11  ;;  %v39_v9 = vld [vmem:[%s6357_s1] sm:$0x3]  ;;  %v131_v11 = vld [vmem:[#allocation2 + $0x70] sm:$0xff]  ;;  %v213_v19 = vld [vmem:[%s6358_s2 + $0x8] sm:$0xff]  ;;  %s5529_s17 = smov 120   ;;  %s5530_s18 = smov 56  }
  0x11   :  { %4975 = vmatpush3.msra.mxu0 %v5598_v3  ;;  %v212_v10 = vld [vmem:[%s6358_s2] sm:$0xff]  ;;  %4986 = vmatpush3.msra.mxu1 %v131_v11  ;;  %v129_v13 = vld [vmem:[#allocation2 + $0x50] sm:$0xff]  ;;  %v4645_v24 = vld [vmem:[%s6361_s5 + $0xf] ss:$0 sm:$0xff]  ;;  %s5531_s19 = smov 80   ;;  %s5532_s20 = smov 112  }
  0x12   :  { %4976 = vmatprep.subr.mxu0 %v5523_v0  ;;  %v130_v12 = vld [vmem:[#allocation2 + $0x60] sm:$0xff]  ;;  %4987 = vmatprep.subr.mxu1 %v5523_v0  ;;  %v127_v20 = vld [vmem:[#allocation2 + $0x30] sm:$0xff]  ;;  %s5533_s21 = smov 48   ;;  %s5534_s22 = smov 72  }
  0x13   :  { %4977 = vmatpush3.msra.mxu0 %v5610_v6  ;;  %4988 = vmatpush3.msra.mxu1 %v130_v12  ;;  %v128_v14 = vld [vmem:[#allocation2 + $0x40] sm:$0xff]  ;;  %v125_v22 = vld [vmem:[#allocation2 + $0x10] sm:$0xff]  ;;  %s5535_s23 = smov 104   ;;  %s5536_s24 = smov 40  }
  0x14   :  { %231 = vrot.lane.b32.xlu0 %v216_v4, %s5525_s11  ;;  %227 = vrot.lane.b32.xlu1 %v214_v5, %s5525_s11  ;;  %v126_v21 = vld [vmem:[#allocation2 + $0x20] sm:$0xff]  ;;  %v4647_v34 = vld [vmem:[%s6361_s5 + $0x10] ss:$0 sm:$0xff] }
  0x15   :  { %4978 = vmatprep.subr.mxu0 %v5523_v0  ;;  %4989 = vmatprep.subr.mxu1 %v5523_v0  ;;  %v124_v23 = vld [vmem:[#allocation2] sm:$0xff] }
  0x16   :  { %4979 = vmatpush3.msra.mxu0 %v5617_v7  ;;  %4990 = vmatpush3.msra.mxu1 %v129_v13  ;;  %v4649_v30 = vld [vmem:[%s6361_s5] ss:$0 sm:$0xff]  ;;  %v4652_v38 = vld [vmem:[%s6361_s5 + $0x1] ss:$0 sm:$0xff] }
  0x17   :  { %4980 = vmatprep.subr.mxu0 %v5523_v0  ;;  %4991 = vmatprep.subr.mxu1 %v5523_v0 }
  0x18   :  { %4981 = vmatpush3.msra.mxu0 %v5625_v8  ;;  %4992 = vmatpush3.msra.mxu1 %v128_v14 }
  0x19   :  { %4983 = vmatmul.mubr.msk.f32.vlgmr.msra.gmra.mxu0 %vm49_vm1, %v39_v9  ;;  %4993 = vmatprep.subr.mxu1 %v5523_v0 }
  0x1a   :  { %5012 = vmatprep.mubr.msk.f32.mxu0 %vm49_vm1, %v212_v10  ;;  %4994 = vmatpush3.msra.mxu1 %v127_v20 }
  0x1b   :  { %4995 = vmatprep.subr.mxu1 %v5523_v0 }
  0x1c   :  { %4996 = vmatpush3.msra.mxu1 %v126_v21 }
  0x1d   :  { %4997 = vmatprep.subr.mxu1 %v5523_v0 }
  0x1e   :  { %4998 = vmatpush3.msra.mxu1 %v125_v22 }
  0x1f   :  { %4999 = vmatprep.subr.mxu1 %v5523_v0 }
  0x20   :  { %5000 = vmatpush3.msra.mxu1 %v124_v23 }
  0x21   :  { %5026 = vmatprep.subr.mxu1 %v5523_v0 }
  0x82   :  { %v234_v15 = vpop.permute.xlu0 %233  ;;  %v230_v16 = vpop.permute.xlu1 %229 }
  0x83   :  { %5004 = vmatprep.subr.mxu0 %v234_v15 }
  0x84   :  { %5005 = vmatpush3.msra.mxu0 %v234_v15 }
  0x86   :  { %v232_v17 = vpop.permute.xlu0 %231  ;;  %v228_v18 = vpop.permute.xlu1 %227 }
  0x87   :  { %5006 = vmatprep.subr.mxu0 %v232_v17 }
  0x88   :  { %5007 = vmatpush3.msra.mxu0 %v232_v17 }
  0x89   :  { %5008 = vmatprep.subr.mxu0 %v230_v16 }
  0x8a   :  { %5009 = vmatpush3.msra.mxu0 %v230_v16 }
  0x8b   :  { %5010 = vmatprep.subr.mxu0 %v228_v18 }
  0x8c   :  { %5011 = vmatpush3.msra.mxu0 %v228_v18 }
  0x8d   :  { %5013 = vmatmul.mubr.msk.f32.vlgmr.msra.gmra.mxu0 %vm49_vm1, %v213_v19  ;;  %5015 = vmatprep.subr.mxu0 %v217_v1 }
  0x8e   :  { %5016 = vmatpush3.msra.mxu0 %v217_v1 }
  0x8f   :  { %5017 = vmatprep.subr.mxu0 %v216_v4 }
  0x90   :  { %5018 = vmatpush3.msra.mxu0 %v216_v4 }
  0x91   :  { %5019 = vmatprep.subr.mxu0 %v215_v2 }
  0x92   :  { %5020 = vmatpush3.msra.mxu0 %v215_v2 }
  0x93   :  { %5021 = vmatprep.subr.mxu0 %v214_v5 }
  0x94   :  { %5022 = vmatpush3.msra.mxu0 %v214_v5 }
  0x95   :  { %5036 = vmatprep.subr.mxu0 %v5523_v0 }
  0xd9   :  { %v119_v25 = vpop.f32.mrf.mxu0 }
  0xda   :  { %v120_v26 = vadd.f32 %v4645_v24, %v119_v25 }
  0xdb   :  { %v4984_v27 = vpop.f32.mrf.mxu0 }
  0xdc   :  { %5412 = vtanh.f32 %v120_v26 }
  0xe9   :  { %v5413_v28 = vpop.eup %5412 }
  0xea   :  { %5002 = vmatmul.mubr.msk.f32.vlgmr.msra.gmra.mxu1 %vm137_vm2, %v5413_v28 }
  0xeb   :  { %5028 = vmatprep.mubr.msk.f32.mxu1 %vm5524_vm0, %v5523_v0 }
 0x14d   :  { %v5014_v29 = vpop.f32.mrf.mxu0 }
 0x14e   :  { %v5662_v33 = vadd.f32 %v5014_v29, %v4649_v30 }
 0x14f   :  { %v311_v31 = vpop.f32.mrf.mxu0 }
 0x150   :  { %v5660_v32 = vadd.f32 %v4649_v30, %v311_v31 }
 0x152   :  { %5023 = vmatprep.mubr.msk.f32.mxu0 %vm49_vm1, %v5660_v32 }
 0x153   :  { %5024 = vmatmul.mubr.msk.f32.vlgmr.msra.gmra.mxu0 %vm49_vm1, %v5662_v33 }
 0x154   :  { %5038 = vmatprep.mubr.msk.f32.mxu0 %vm5524_vm0, %v5523_v0 }
 0x1aa   :  { %v207_v35 = vpop.f32.mrf.mxu1 }
 0x1ab   :  { %v208_v36 = vadd.f32 %v4647_v34, %v207_v35 }
 0x1ac   :  { %v5003_v37 = vpop.f32.mrf.mxu1 }
 0x1ad   :  { %211 = vst [vmem:[%s6362_s6] sm:$0x3] %v208_v36  ;;  %s5527_s6 = smov 64  }
 0x213   :  { %v5025_v39 = vpop.f32.mrf.mxu0 }
 0x214   :  { %v5679_v40 = vadd.f32 %v5025_v39, %v4652_v38 }
 0x215   :  { %v397_v41 = vpop.f32.mrf.mxu0 }
 0x216   :  { %v5681_v42 = vadd.f32 %v4652_v38, %v397_v41  ;;  %485 = vrot.lane.b32.xlu1 %v5679_v40, %s5526_s15 }
 0x218   :  { %407 = vrot.lane.b32.xlu0 %v5681_v42, %s5526_s15 }
 0x288   :  { %v486_v44 = vpop.permute.xlu1 %485 }
 0x28a   :  { %v408_v43 = vpop.permute.xlu0 %407 }
 0x28b   :  { %5027 = vmatpush3.xpose.msk.msra.mxu1 %vm409_vm3, %v408_v43 }
 0x28c   :  { %5031 = vmatprep.subr.mxu1 %v5523_v0 }
 0x28e   :  { %5029 = vmatmul.mubr.msk.f32.vlgmr.msra.gmra.mxu1 %vm409_vm3, %v5681_v42 }
 0x28f   :  { %5032 = vmatpush3.xpose.msk.msra.mxu1 %vm409_vm3, %v486_v44  ;;  %5033 = vmatprep.mubr.msk.f32.mxu1 %vm5524_vm0, %v5523_v0 }
 0x290   :  { %5041 = vmatprep.subr.mxu1 %v5523_v0 }
 0x292   :  { %5034 = vmatmul.mubr.msk.f32.vlgmr.msra.gmra.mxu1 %vm409_vm3, %v5679_v40 }
 0x293   :  { %5043 = vmatprep.mubr.msk.f32.mxu1 %vm5524_vm0, %v5523_v0 }
 0x34e   :  { %v480_v45 = vpop.f32.mrf.mxu1 }
 0x34f   :  { %v561_v46 = vmul.f32 0.35355338, %v480_v45 }
 0x350   :  { %v5030_v47 = vpop.f32.mrf.mxu1 }
 0x351   :  { %v563_v48 = vsel %vm409_vm3, %v561_v46, -inf }
 0x352   :  { %564 = vmax.xlane.f32.xlu0 %v563_v48  ;;  %v557_v49 = vpop.f32.mrf.mxu1 }
 0x353   :  { %v562_v50 = vmul.f32 0.35355338, %v557_v49 }
 0x354   :  { %v5035_v51 = vpop.f32.mrf.mxu1 }
 0x355   :  { %v566_v52 = vsel %vm409_vm3, %v562_v50, -inf }
 0x356   :  { %567 = vmax.xlane.f32.xlu1 %v566_v52 }
 0x367   :  { %585 = vrot.lane.b32.xlu1 %v5681_v42, %s5527_s6 }
 0x368   :  { %661 = vrot.lane.b32.xlu0 %v5679_v40, %s5527_s6 }
 0x36b   :  { %740 = vrot.lane.b32.xlu1 %v5681_v42, %s5528_s16 }
 0x36f   :  { %818 = vrot.lane.b32.xlu1 %v5679_v40, %s5528_s16 }
 0x373   :  { %816 = vrot.lane.b32.xlu1 %v5679_v40, %s5529_s17 }
 0x3db   :  { %v565_v53 = vpop.xlane.xlu0 %564 }
 0x3dc   :  { %v569_v54 = vsub.f32 %v561_v46, %v565_v53 }
 0x3de   :  { %v571_v55 = vmul.f32 1.442695, %v569_v54 }
 0x3df   :  { %v662_v56 = vpop.permute.xlu0 %661  ;;  %v568_v57 = vpop.xlane.xlu1 %567 }
 0x3e0   :  { %5414 = vpow2.f32 %v571_v55  ;;  %v570_v58 = vsub.f32 %v562_v50, %v568_v57  ;;  %5042 = vmatpush3.msra.mxu1 %v662_v56 }
 0x3e1   :  { %5051 = vmatprep.subr.mxu1 %v5523_v0 }
 0x3e2   :  { %v573_v59 = vmul.f32 1.442695, %v570_v58 }
 0x3e3   :  { %v586_v60 = vpop.permute.xlu1 %585 }
 0x3e4   :  { %5416 = vpow2.f32 %v573_v59  ;;  %5037 = vmatpush3.msra.mxu0 %v586_v60 }
 0x3e5   :  { %5046 = vmatprep.subr.mxu0 %v5523_v0 }
 0x3e7   :  { %v741_v5 = vpop.permute.xlu1 %740 }
 0x3eb   :  { %v819_v12 = vpop.permute.xlu1 %818 }
 0x3ed   :  { %v5415_v61 = vpop.eup %5414 }
 0x3ee   :  { %v575_v62 = vsel %vm409_vm3, %v5415_v61, 0.0 }
 0x3ef   :  { %576 = vadd.xlane.f32.xlu0 %v575_v62  ;;  %v817_v15 = vpop.permute.xlu1 %816 }
 0x3f1   :  { %v5417_v63 = vpop.eup %5416 }
 0x3f2   :  { %v578_v1 = vsel %vm409_vm3, %v5417_v63, 0.0 }
 0x3f3   :  { %579 = vadd.xlane.f32.xlu0 %v578_v1 }
 0x409   :  { %738 = vrot.lane.b32.xlu0 %v5681_v42, %s5529_s17 }
 0x478   :  { %v577_v2 = vpop.xlane.xlu0 %576 }
 0x479   :  { %5418 = vrcp.f32 %v577_v2 }
 0x47c   :  { %v580_v4 = vpop.xlane.xlu0 %579 }
 0x47d   :  { %5420 = vrcp.f32 %v580_v4 }
 0x480   :  { %v739_v14 = vpop.permute.xlu0 %738 }
 0x486   :  { %v5419_v9 = vpop.eup %5418 }
 0x487   :  { %v583_v10 = vmul.f32 %v5419_v9, %v5415_v61 }
 0x489   :  { %5039 = vmatmul.mubr.msk.f32.vlgmr.msra.gmra.mxu0 %vm409_vm3, %v583_v10 }
 0x48a   :  { %v5421_v11 = vpop.eup %5420  ;;  %5047 = vmatpush3.xpose.msk.msra.mxu0 %vm409_vm3, %v741_v5  ;;  %5048 = vmatprep.mubr.msk.f32.mxu0 %vm5524_vm0, %v5523_v0 }
 0x48b   :  { %v584_v13 = vmul.f32 %v5421_v11, %v5417_v63  ;;  %5056 = vmatprep.subr.mxu0 %v5523_v0 }
 0x48d   :  { %5044 = vmatmul.mubr.msk.f32.vlgmr.msra.gmra.mxu1 %vm409_vm3, %v584_v13  ;;  %5049 = vmatmul.mubr.msk.f32.vlgmr.msra.gmra.mxu0 %vm409_vm3, %v739_v14 }
 0x48e   :  { %5052 = vmatpush3.xpose.msk.msra.mxu1 %vm409_vm3, %v819_v12  ;;  %5053 = vmatprep.mubr.msk.f32.mxu1 %vm5524_vm0, %v5523_v0 }
 0x48f   :  { %5061 = vmatprep.subr.mxu1 %v5523_v0  ;;  %5058 = vmatprep.mubr.msk.f32.mxu0 %vm5524_vm0, %v5523_v0 }
 0x491   :  { %5054 = vmatmul.mubr.msk.f32.vlgmr.msra.gmra.mxu1 %vm409_vm3, %v817_v15 }
 0x492   :  { %5063 = vmatprep.mubr.msk.f32.mxu1 %vm5524_vm0, %v5523_v0 }
 0x549   :  { %v657_v16 = vpop.f32.mrf.mxu0 }
 0x54b   :  { %v5040_v17 = vpop.f32.mrf.mxu0 }
 0x54d   :  { %v733_v18 = vpop.f32.mrf.mxu1  ;;  %v812_v19 = vpop.f32.mrf.mxu0 }
 0x54e   :  { %v894_v20 = vmul.f32 0.35355338, %v812_v19 }
 0x54f   :  { %v5045_v21 = vpop.f32.mrf.mxu1  ;;  %v5050_v22 = vpop.f32.mrf.mxu0 }
 0x550   :  { %v896_v23 = vsel %vm409_vm3, %v894_v20, -inf }
 0x551   :  { %897 = vmax.xlane.f32.xlu0 %v896_v23  ;;  %v890_v24 = vpop.f32.mrf.mxu1 }
 0x552   :  { %v895_v25 = vmul.f32 0.35355338, %v890_v24 }
 0x553   :  { %v5055_v26 = vpop.f32.mrf.mxu1 }
 0x554   :  { %v899_v27 = vsel %vm409_vm3, %v895_v25, -inf }
 0x555   :  { %900 = vmax.xlane.f32.xlu1 %v899_v27 }
 0x566   :  { %918 = vrot.lane.b32.xlu1 %v5681_v42, %s5530_s18 }
 0x56a   :  { %1072 = vrot.lane.b32.xlu1 %v5617_v7, %s5525_s11 }
 0x56e   :  { %1157 = vrot.lane.b32.xlu1 %v5625_v8, %s5525_s11 }
 0x572   :  { %1321 = vrot.lane.b32.xlu1 %v5679_v40, %s5531_s19 }
 0x576   :  { %1319 = vrot.lane.b32.xlu1 %v5679_v40, %s5532_s20 }
 0x5da   :  { %v898_v28 = vpop.xlane.xlu0 %897 }
 0x5db   :  { %v902_v29 = vsub.f32 %v894_v20, %v898_v28 }
 0x5dd   :  { %v904_v30 = vmul.f32 1.442695, %v902_v29 }
 0x5de   :  { %v901_v31 = vpop.xlane.xlu1 %900 }
 0x5df   :  { %5422 = vpow2.f32 %v904_v30  ;;  %v903_v34 = vsub.f32 %v895_v25, %v901_v31 }
 0x5e1   :  { %v906_v35 = vmul.f32 1.442695, %v903_v34 }
 0x5e2   :  { %v919_v36 = vpop.permute.xlu1 %918 }
 0x5e3   :  { %5424 = vpow2.f32 %v906_v35  ;;  %5057 = vmatpush3.msra.mxu0 %v919_v36 }
 0x5e6   :  { %v1073_v37 = vpop.permute.xlu1 %1072 }
 0x5e7   :  { %5066 = vmatprep.subr.mxu0 %v1073_v37 }
 0x5ea   :  { %v1158_v47 = vpop.permute.xlu1 %1157 }
 0x5ec   :  { %v5423_v38 = vpop.eup %5422 }
 0x5ed   :  { %v908_v39 = vsel %vm409_vm3, %v5423_v38, 0.0 }
 0x5ee   :  { %909 = vadd.xlane.f32.xlu0 %v908_v39  ;;  %v1322_v52 = vpop.permute.xlu1 %1321 }
 0x5f0   :  { %v5425_v41 = vpop.eup %5424 }
 0x5f1   :  { %v911_v43 = vsel %vm409_vm3, %v5425_v41, 0.0 }
 0x5f2   :  { %912 = vadd.xlane.f32.xlu0 %v911_v43  ;;  %v1320_v53 = vpop.permute.xlu1 %1319 }
 0x608   :  { %994 = vrot.lane.b32.xlu0 %v5679_v40, %s5530_s18 }
 0x60c   :  { %1243 = vrot.lane.b32.xlu0 %v5681_v42, %s5531_s19 }
 0x610   :  { %1241 = vrot.lane.b32.xlu0 %v5681_v42, %s5532_s20 }
 0x677   :  { %v910_v44 = vpop.xlane.xlu0 %909 }
 0x678   :  { %5426 = vrcp.f32 %v910_v44 }
 0x67b   :  { %v913_v45 = vpop.xlane.xlu0 %912 }
 0x67c   :  { %5428 = vrcp.f32 %v913_v45 }
 0x67f   :  { %v995_v46 = vpop.permute.xlu0 %994 }
 0x680   :  { %5062 = vmatpush3.msra.mxu1 %v995_v46 }
 0x681   :  { %5071 = vmatprep.subr.mxu1 %v1158_v47 }
 0x683   :  { %v1244_v55 = vpop.permute.xlu0 %1243 }
 0x685   :  { %v5427_v48 = vpop.eup %5426 }
 0x686   :  { %v916_v49 = vmul.f32 %v5427_v48, %v5423_v38 }
 0x687   :  { %v1242_v59 = vpop.permute.xlu0 %1241 }
 0x688   :  { %5059 = vmatmul.mubr.msk.f32.vlgmr.msra.gmra.mxu0 %vm409_vm3, %v916_v49 }
 0x689   :  { %v5429_v50 = vpop.eup %5428  ;;  %5067 = vmatpush3.msra.mxu0 %v1073_v37 }
 0x68a   :  { %v917_v51 = vmul.f32 %v5429_v50, %v5425_v41  ;;  %5076 = vmatprep.subr.mxu0 %v5523_v0 }
 0x68c   :  { %5064 = vmatmul.mubr.msk.f32.vlgmr.msra.gmra.mxu1 %vm409_vm3, %v917_v51 }
 0x68d   :  { %5073 = vmatprep.mubr.msk.f32.mxu1 %vm409_vm3, %v657_v16  ;;  %5072 = vmatpush3.msra.mxu1 %v1158_v47 }
 0x68e   :  { %5081 = vmatprep.subr.mxu1 %v5523_v0 }
 0x690   :  { %5074 = vmatmul.mubr.msk.f32.vlgmr.msra.gmra.mxu1 %vm409_vm3, %v733_v18 }
 0x691   :  { %5082 = vmatpush3.xpose.msk.msra.mxu1 %vm409_vm3, %v1322_v52  ;;  %5083 = vmatprep.mubr.msk.f32.mxu1 %vm5524_vm0, %v5523_v0 }
 0x692   :  { %5091 = vmatprep.subr.mxu1 %v5523_v0 }
 0x694   :  { %5084 = vmatmul.mubr.msk.f32.vlgmr.msra.gmra.mxu1 %vm409_vm3, %v1320_v53 }
 0x695   :  { %5093 = vmatprep.mubr.msk.f32.mxu1 %vm5524_vm0, %v5523_v0 }
 0x748   :  { %v990_v54 = vpop.f32.mrf.mxu0 }
 0x749   :  { %5068 = vmatprep.mubr.msk.f32.mxu0 %vm409_vm3, %v990_v54 }
 0x74a   :  { %v5060_v56 = vpop.f32.mrf.mxu0 }
 0x74c   :  { %v1066_v57 = vpop.f32.mrf.mxu1 }
 0x74d   :  { %5069 = vmatmul.mubr.msk.f32.vlgmr.msra.gmra.mxu0 %vm409_vm3, %v1066_v57 }
 0x74e   :  { %5077 = vmatpush3.xpose.msk.msra.mxu0 %vm409_vm3, %v1244_v55  ;;  %v5065_v58 = vpop.f32.mrf.mxu1  ;;  %5078 = vmatprep.mubr.msk.f32.mxu0 %vm5524_vm0, %v5523_v0 }
 0x74f   :  { %5086 = vmatprep.subr.mxu0 %v5523_v0 }
 0x750   :  { %v5770_v60 = vpop.f32.mrf.mxu1 }
 0x751   :  { %5079 = vmatmul.mubr.msk.f32.vlgmr.msra.gmra.mxu0 %vm409_vm3, %v1242_v59 }
 0x752   :  { %v5773_v61 = vpop.f32.mrf.mxu1  ;;  %5088 = vmatprep.mubr.msk.f32.mxu0 %vm5524_vm0, %v5523_v0 }
 0x754   :  { %v1393_v62 = vpop.f32.mrf.mxu1 }
 0x755   :  { %v1398_v63 = vmul.f32 0.35355338, %v1393_v62 }
 0x756   :  { %v5085_v1 = vpop.f32.mrf.mxu1 }
 0x757   :  { %v1402_v2 = vsel %vm409_vm3, %v1398_v63, -inf }
 0x758   :  { %1403 = vmax.xlane.f32.xlu1 %v1402_v2 }
 0x769   :  { %1421 = vrot.lane.b32.xlu1 %v5681_v42, %s5533_s21 }
 0x76d   :  { %1575 = vrot.lane.b32.xlu1 %v5610_v6, %s5525_s11 }
 0x771   :  { %1663 = vrot.lane.b32.xlu1 %v5681_v42, %s5534_s22 }
 0x775   :  { %1661 = vrot.lane.b32.xlu1 %v5681_v42, %s5535_s23 }
 0x7e1   :  { %v1404_v4 = vpop.xlane.xlu1 %1403 }
 0x7e2   :  { %v1406_v10 = vsub.f32 %v1398_v63, %v1404_v4 }
 0x7e4   :  { %v1409_v11 = vmul.f32 1.442695, %v1406_v10 }
 0x7e5   :  { %v1422_v5 = vpop.permute.xlu1 %1421 }
 0x7e6   :  { %5087 = vmatpush3.msra.mxu0 %v1422_v5  ;;  %5430 = vpow2.f32 %v1409_v11 }
 0x7e9   :  { %v1576_v9 = vpop.permute.xlu1 %1575 }
 0x7ea   :  { %5096 = vmatprep.subr.mxu0 %v1576_v9 }
 0x7ed   :  { %v1664_v28 = vpop.permute.xlu1 %1663 }
 0x7f1   :  { %v1662_v31 = vpop.permute.xlu1 %1661 }
 0x7f3   :  { %v5431_v18 = vpop.eup %5430 }
 0x7f4   :  { %v1414_v19 = vsel %vm409_vm3, %v5431_v18, 0.0 }
 0x80d   :  { %v5786_v12 = vpop.f32.mrf.mxu0 }
 0x80e   :  { %v1238_v51 = vadd.f32 %v5770_v60, %v5786_v12 }
 0x80f   :  { %v5788_v13 = vpop.f32.mrf.mxu0 }
 0x810   :  { %v1233_v53 = vadd.f32 %v5773_v61, %v5788_v13 }
 0x811   :  { %v1315_v14 = vpop.f32.mrf.mxu0 }
 0x812   :  { %v1397_v15 = vmul.f32 0.35355338, %v1315_v14 }
 0x813   :  { %v5080_v16 = vpop.f32.mrf.mxu0 }
 0x814   :  { %v1399_v17 = vsel %vm409_vm3, %v1397_v15, -inf }
 0x815   :  { %1400 = vmax.xlane.f32.xlu0 %v1399_v17 }
 0x819   :  { %1415 = vadd.xlane.f32.xlu0 %v1414_v19 }
 0x89e   :  { %v1401_v20 = vpop.xlane.xlu0 %1400 }
 0x89f   :  { %v1405_v21 = vsub.f32 %v1397_v15, %v1401_v20 }
 0x8a1   :  { %v1407_v22 = vmul.f32 1.442695, %v1405_v21  ;;  %v4687_v21 = vld [vmem:[%s6361_s5 + $0x2] ss:$0 sm:$0xff] }
 0x8a2   :  { %v1416_v25 = vpop.xlane.xlu0 %1415 }
 0x8a3   :  { %5432 = vpow2.f32 %v1407_v22 }
 0x8a4   :  { %5434 = vrcp.f32 %v1416_v25 }
 0x8b0   :  { %v5433_v23 = vpop.eup %5432 }
 0x8b1   :  { %v1411_v24 = vsel %vm409_vm3, %v5433_v23, 0.0  ;;  %v5435_v27 = vpop.eup %5434 }
 0x8b2   :  { %1412 = vadd.xlane.f32.xlu0 %v1411_v24  ;;  %v1420_v30 = vmul.f32 %v5435_v27, %v5431_v18 }
 0x8c8   :  { %1497 = vrot.lane.b32.xlu0 %v5679_v40, %s5533_s21 }
 0x8cc   :  { %1741 = vrot.lane.b32.xlu0 %v5679_v40, %s5534_s22 }
 0x8d0   :  { %1739 = vrot.lane.b32.xlu0 %v5679_v40, %s5535_s23 }
 0x93b   :  { %v1413_v26 = vpop.xlane.xlu0 %1412 }
 0x93c   :  { %5436 = vrcp.f32 %v1413_v26 }
 0x93f   :  { %v1498_v29 = vpop.permute.xlu0 %1497 }
 0x940   :  { %5092 = vmatpush3.msra.mxu1 %v1498_v29 }
 0x941   :  { %5094 = vmatmul.mubr.msk.f32.vlgmr.msra.gmra.mxu1 %vm409_vm3, %v1420_v30  ;;  %5101 = vmatprep.subr.mxu1 %v5523_v0 }
 0x942   :  { %5102 = vmatpush3.xpose.msk.msra.mxu1 %vm409_vm3, %v1664_v28  ;;  %5103 = vmatprep.mubr.msk.f32.mxu1 %vm5524_vm0, %v5523_v0 }
 0x943   :  { %5111 = vmatprep.subr.mxu1 %v5523_v0  ;;  %v1742_v44 = vpop.permute.xlu0 %1741 }
 0x945   :  { %5104 = vmatmul.mubr.msk.f32.vlgmr.msra.gmra.mxu1 %vm409_vm3, %v1662_v31  ;;  %v2235_v31 = vld [vmem:[%s6356_s0] sm:$0xff] }
 0x946   :  { %5113 = vmatprep.mubr.msk.f32.mxu1 %vm5524_vm0, %v5523_v0 }
 0x947   :  { %v1740_v47 = vpop.permute.xlu0 %1739 }
 0x949   :  { %v5437_v34 = vpop.eup %5436 }
 0x94a   :  { %v1419_v35 = vmul.f32 %v5437_v34, %v5433_v23  ;;  %v2237_v34 = vld [vmem:[%s6356_s0 + $0x10] sm:$0xff] }
 0x94c   :  { %5089 = vmatmul.mubr.msk.f32.vlgmr.msra.gmra.mxu0 %vm409_vm3, %v1419_v35  ;;  %v2238_v35 = vld [vmem:[%s6356_s0 + $0x18] sm:$0xff] }
 0x94d   :  { %5097 = vmatpush3.msra.mxu0 %v1576_v9 }
 0x94e   :  { %5106 = vmatprep.subr.mxu0 %v5523_v0 }
 0xa01   :  { %v1569_v36 = vpop.f32.mrf.mxu1 }
 0xa03   :  { %v5095_v37 = vpop.f32.mrf.mxu1 }
 0xa04   :  { %v2240_v37 = vld [vmem:[%s6356_s0 + $0x28] sm:$0xff] }
 0xa05   :  { %v1735_v38 = vpop.f32.mrf.mxu1 }
 0xa06   :  { %v1817_v39 = vmul.f32 0.35355338, %v1735_v38  ;;  %v2241_v38 = vld [vmem:[%s6356_s0 + $0x30] sm:$0xff] }
 0xa07   :  { %v5105_v41 = vpop.f32.mrf.mxu1 }
 0xa08   :  { %v1819_v43 = vsel %vm409_vm3, %v1817_v39, -inf }
 0xa09   :  { %1820 = vmax.xlane.f32.xlu1 %v1819_v43 }
 0xa0c   :  { %v1493_v45 = vpop.f32.mrf.mxu0 }
 0xa0d   :  { %5098 = vmatprep.mubr.msk.f32.mxu0 %vm409_vm3, %v1493_v45 }
 0xa0e   :  { %v5090_v46 = vpop.f32.mrf.mxu0  ;;  %5099 = vmatmul.mubr.msk.f32.vlgmr.msra.gmra.mxu0 %vm409_vm3, %v1569_v36  ;;  %v2239_v36 = vld [vmem:[%s6356_s0 + $0x20] sm:$0xff] }
 0xa0f   :  { %5107 = vmatpush3.xpose.msk.msra.mxu0 %vm409_vm3, %v1742_v44  ;;  %5108 = vmatprep.mubr.msk.f32.mxu0 %vm5524_vm0, %v5523_v0 }
 0xa10   :  { %5116 = vmatprep.subr.mxu0 %v5523_v0 }
 0xa12   :  { %5109 = vmatmul.mubr.msk.f32.vlgmr.msra.gmra.mxu0 %vm409_vm3, %v1740_v47 }
 0xa13   :  { %5118 = vmatprep.mubr.msk.f32.mxu0 %vm5524_vm0, %v5523_v0 }
 0xa92   :  { %v1821_v48 = vpop.xlane.xlu1 %1820 }
 0xa93   :  { %v1825_v49 = vsub.f32 %v1817_v39, %v1821_v48  ;;  %v2242_v39 = vld [vmem:[%s6356_s0 + $0x38] sm:$0xff] }
 0xa95   :  { %v1827_v50 = vmul.f32 1.442695, %v1825_v49 }
 0xa97   :  { %5438 = vpow2.f32 %v1827_v50 }
 0xaa4   :  { %v5439_v63 = vpop.eup %5438 }
 0xaa5   :  { %v1831_v1 = vsel %vm409_vm3, %v5439_v63, 0.0 }
 0xace   :  { %v5100_v52 = vpop.f32.mrf.mxu0 }
 0xacf   :  { %v1660_v54 = vadd.f32 %v5100_v52, %v1238_v51 }
 0xad0   :  { %v1650_v55 = vpop.f32.mrf.mxu0 }
 0xad1   :  { %v1659_v56 = vadd.f32 %v1650_v55, %v1233_v53 }
 0xad2   :  { %v1813_v57 = vpop.f32.mrf.mxu0 }
 0xad3   :  { %v1818_v58 = vmul.f32 0.35355338, %v1813_v57 }
 0xad4   :  { %v5110_v59 = vpop.f32.mrf.mxu0 }
 0xad5   :  { %v1822_v62 = vsel %vm409_vm3, %v1818_v58, -inf }
 0xad6   :  { %1823 = vmax.xlane.f32.xlu0 %v1822_v62 }
 0xada   :  { %1832 = vadd.xlane.f32.xlu0 %v1831_v1 }
 0xaf0   :  { %1841 = vrot.lane.b32.xlu0 %v5681_v42, %s5536_s24 }
 0xb5f   :  { %v1824_v60 = vpop.xlane.xlu0 %1823 }
 0xb60   :  { %v1826_v2 = vsub.f32 %v1818_v58, %v1824_v60 }
 0xb62   :  { %v1829_v4 = vmul.f32 1.442695, %v1826_v2 }
 0xb63   :  { %v1833_v61 = vpop.xlane.xlu0 %1832 }
 0xb64   :  { %5440 = vpow2.f32 %v1829_v4 }
 0xb65   :  { %5442 = vrcp.f32 %v1833_v61 }
 0xb67   :  { %v1842_v5 = vpop.permute.xlu0 %1841 }
 0xb68   :  { %5112 = vmatpush3.msra.mxu1 %v1842_v5 }
 0xb71   :  { %v5441_v9 = vpop.eup %5440 }
 0xb72   :  { %v5443_v10 = vpop.eup %5442  ;;  %v1834_v11 = vsel %vm409_vm3, %v5441_v9, 0.0 }
 0xb73   :  { %1835 = vadd.xlane.f32.xlu1 %v1834_v11  ;;  %v1839_v12 = vmul.f32 %v5443_v10, %v5439_v63 }
 0xb75   :  { %5114 = vmatmul.mubr.msk.f32.vlgmr.msra.gmra.mxu1 %vm409_vm3, %v1839_v12 }
 0xb84   :  { %1917 = vrot.lane.b32.xlu1 %v5679_v40, %s5536_s24 }
 0xb88   :  { %1995 = vrot.lane.b32.xlu1 %v5598_v3, %s5525_s11 }
 0xbfc   :  { %v1836_v42 = vpop.xlane.xlu1 %1835 }
 0xbfd   :  { %5444 = vrcp.f32 %v1836_v42 }
 0xc00   :  { %v1918_v13 = vpop.permute.xlu1 %1917 }
 0xc01   :  { %5117 = vmatpush3.msra.mxu0 %v1918_v13 }
 0xc04   :  { %v1996_v14 = vpop.permute.xlu1 %1995 }
 0xc05   :  { %5121 = vmatprep.subr.mxu1 %v1996_v14 }
 0xc06   :  { %5122 = vmatpush3.msra.mxu1 %v1996_v14 }
 0xc0a   :  { %v5445_v15 = vpop.eup %5444 }
 0xc0b   :  { %v1840_v16 = vmul.f32 %v5445_v15, %v5441_v9 }
 0xc0d   :  { %5119 = vmatmul.mubr.msk.f32.vlgmr.msra.gmra.mxu0 %vm409_vm3, %v1840_v16 }
 0xc35   :  { %v1913_v17 = vpop.f32.mrf.mxu1 }
 0xc36   :  { %5123 = vmatprep.mubr.msk.f32.mxu1 %vm409_vm3, %v1913_v17  ;;  %v4688_v17 = vld [vmem:[%s6361_s5 + $0x3] ss:$0 sm:$0xff] }
 0xc37   :  { %v5115_v18 = vpop.f32.mrf.mxu1 }
 0xccd   :  { %v1989_v19 = vpop.f32.mrf.mxu0 }
 0xcce   :  { %5124 = vmatmul.mubr.msk.f32.vlgmr.msra.gmra.mxu1 %vm409_vm3, %v1989_v19 }
 0xccf   :  { %v5120_v40 = vpop.f32.mrf.mxu0  ;;  %5145 = vmatprep.mubr.msk.f32.mxu1 %vm49_vm1, %v2235_v31 }
 0xd8e   :  { %v5125_v20 = vpop.f32.mrf.mxu1 }
 0xd8f   :  { %v2080_v22 = vadd.f32 %v5125_v20, %v1660_v54  ;;  %v4693_v54 = vld [vmem:[%s6361_s5 + $0x6] ss:$0 sm:$0xff] }
 0xd90   :  { %v2070_v23 = vpop.f32.mrf.mxu1 }
 0xd91   :  { %v2087_v24 = vadd.f32 %v4687_v21, %v2080_v22  ;;  %v2079_v25 = vadd.f32 %v2070_v23, %v1659_v56 }
 0xd93   :  { %v2086_v26 = vadd.f32 %v4687_v21, %v2079_v25  ;;  %v2089_v27 = vadd.f32 %v2087_v24, %v5662_v33  ;;  %v2246_v33 = vld [vmem:[%s6359_s3 + $0x88] sm:$0xff]  ;;  %v4689_v21 = vld [vmem:[%s6361_s5 + $0x4] ss:$0 sm:$0xff] }
 0xd94   :  { %5137 = vmatprep.subr.mxu1 %v2246_v33 }
 0xd95   :  { %v2093_v28 = vsel %vm49_vm1, %v2089_v27, 0.0  ;;  %v2088_v29 = vadd.f32 %v2086_v26, %v5660_v32  ;;  %v2245_v32 = vld [vmem:[%s6359_s3 + $0x60] sm:$0xff]  ;;  %5138 = vmatpush3.msra.mxu1 %v2246_v33 }
 0xd96   :  { %2094 = vadd.xlane.f32.xlu1 %v2093_v28  ;;  %5139 = vmatprep.subr.mxu1 %v2245_v32 }
 0xd97   :  { %v2090_v30 = vsel %vm49_vm1, %v2088_v29, 0.0  ;;  %5140 = vmatpush3.msra.mxu1 %v2245_v32 }
 0xd98   :  { %2091 = vadd.xlane.f32.xlu0 %v2090_v30 }
 0xda7   :  { %2148 = vrot.lane.b32.xlu1 %v5598_v3, %s5527_s6  ;;  %v2244_v3 = vld [vmem:[%s6359_s3 + $0x38] sm:$0xff] }
 0xda8   :  { %5141 = vmatprep.subr.mxu1 %v2244_v3 }
 0xda9   :  { %5142 = vmatpush3.msra.mxu1 %v2244_v3 }
 0xdab   :  { %2144 = vrot.lane.b32.xlu1 %v5617_v7, %s5527_s6  ;;  %v2243_v7 = vld [vmem:[%s6359_s3 + $0x10] sm:$0xff] }
 0xdac   :  { %5143 = vmatprep.subr.mxu1 %v2243_v7 }
 0xdad   :  { %5144 = vmatpush3.msra.mxu1 %v2243_v7 }
 0xdae   :  { %5168 = vmatprep.subr.mxu1 %v5523_v0 }
 0xdaf   :  { %2142 = vrot.lane.b32.xlu1 %v5625_v8, %s5527_s6  ;;  %v2236_v8 = vld [vmem:[%s6356_s0 + $0x8] sm:$0xff] }
 0xdb0   :  { %5146 = vmatmul.mubr.msk.f32.vlgmr.msra.gmra.mxu1 %vm49_vm1, %v2236_v8 }
 0xdb1   :  { %5148 = vmatprep.mubr.msk.f32.mxu1 %vm49_vm1, %v2237_v34 }
 0xdb4   :  { %5149 = vmatmul.mubr.msk.f32.gmra.mxu1 %vm49_vm1, %v2238_v35 }
 0xdb5   :  { %5151 = vmatprep.mubr.msk.f32.mxu1 %vm49_vm1, %v2239_v36 }
 0xdb8   :  { %5152 = vmatmul.mubr.msk.f32.gmra.mxu1 %vm49_vm1, %v2240_v37 }
 0xdb9   :  { %5154 = vmatprep.mubr.msk.f32.mxu1 %vm49_vm1, %v2241_v38 }
 0xdbc   :  { %5155 = vmatmul.mubr.msk.f32.gmra.mxu1 %vm49_vm1, %v2242_v39 }
 0xdbd   :  { %5176 = vmatprep.mubr.msk.f32.mxu1 %vm5524_vm0, %v5523_v0 }
 0xe1f   :  { %v2095_v41 = vpop.xlane.xlu1 %2094 }
 0xe20   :  { %v2098_v43 = vmul.f32 0.03125, %v2095_v41 }
 0xe21   :  { %v2092_v44 = vpop.xlane.xlu0 %2091 }
 0xe22   :  { %v2100_v45 = vsub.f32 %v2089_v27, %v2098_v43  ;;  %v2097_v46 = vmul.f32 0.03125, %v2092_v44  ;;  %v4690_v27 = vld [vmem:[%s6361_s5 + $0x5] ss:$0 sm:$0xff] }
 0xe23   :  { %v2149_v52 = vpop.permute.xlu1 %2148 }
 0xe24   :  { %v2099_v47 = vsub.f32 %v2088_v29, %v2097_v46  ;;  %v2102_v48 = vmul.f32 %v2100_v45, %v2100_v45  ;;  %5126 = vmatprep.subr.mxu0 %v2149_v52 }
 0xe25   :  { %5127 = vmatpush3.msra.mxu0 %v2149_v52 }
 0xe26   :  { %v2106_v49 = vsel %vm49_vm1, %v2102_v48, 0.0  ;;  %v2101_v50 = vmul.f32 %v2099_v47, %v2099_v47 }
 0xe27   :  { %2107 = vadd.xlane.f32.xlu0 %v2106_v49  ;;  %v2145_v11 = vpop.permute.xlu1 %2144 }
 0xe28   :  { %v2103_v51 = vsel %vm49_vm1, %v2101_v50, 0.0 }
 0xe2b   :  { %2104 = vadd.xlane.f32.xlu0 %v2103_v51  ;;  %v2143_v14 = vpop.permute.xlu1 %2142 }
 0xe41   :  { %2146 = vrot.lane.b32.xlu0 %v5610_v6, %s5527_s6 }
 0xe70   :  { %v5147_v53 = vpop.f32.mrf.mxu1 }
 0xe71   :  { %v5948_v26 = vadd.f32 %v5147_v53, %v4693_v54 }
 0xe72   :  { %v2342_v55 = vpop.f32.mrf.mxu1 }
 0xe73   :  { %v5902_v56 = vadd.f32 %v4693_v54, %v2342_v55 }
 0xe74   :  { %v5150_v57 = vpop.f32.mrf.mxu1 }
 0xe75   :  { %v5933_v23 = vadd.f32 %v5150_v57, %v4693_v54 }
 0xe76   :  { %v2352_v58 = vpop.f32.mrf.mxu1 }
 0xe77   :  { %v5941_v25 = vadd.f32 %v4693_v54, %v2352_v58 }
 0xe78   :  { %v5153_v59 = vpop.f32.mrf.mxu1 }
 0xe79   :  { %v5911_v2 = vadd.f32 %v5153_v59, %v4693_v54 }
 0xe7a   :  { %v2362_v62 = vpop.f32.mrf.mxu1 }
 0xe7b   :  { %v5916_v4 = vadd.f32 %v4693_v54, %v2362_v62 }
 0xe7c   :  { %v5156_v63 = vpop.f32.mrf.mxu1 }
 0xe7d   :  { %v5904_v1 = vadd.f32 %v5156_v63, %v4693_v54 }
 0xe7e   :  { %v2372_v60 = vpop.f32.mrf.mxu1 }
 0xe7f   :  { %5169 = vmatpush3.xpose.msk.msra.mxu1 %vm409_vm3, %v5904_v1  ;;  %v5908_v6 = vadd.f32 %v4693_v54, %v2372_v60 }
 0xe80   :  { %5170 = vmatprep.subr.mxu1 %v5523_v0 }
 0xe83   :  { %5171 = vmatpush3.xpose.msk.msra.mxu1 %vm409_vm3, %v5908_v6 }
 0xe84   :  { %5172 = vmatprep.subr.mxu1 %v5523_v0 }
 0xe87   :  { %5173 = vmatpush3.xpose.msk.msra.mxu1 %vm409_vm3, %v5911_v2 }
 0xe88   :  { %5174 = vmatprep.subr.mxu1 %v5523_v0 }
 0xe8b   :  { %5175 = vmatpush3.xpose.msk.msra.mxu1 %vm409_vm3, %v5916_v4 }
 0xe8c   :  { %5190 = vmatprep.subr.mxu1 %v5523_v0 }
 0xeb0   :  { %v2108_v61 = vpop.xlane.xlu0 %2107 }
 0xeb1   :  { %v2110_v5 = vmul.f32 0.03125, %v2108_v61 }
 0xeb3   :  { %v2112_v9 = vadd.f32 1e-12, %v2110_v5 }
 0xeb4   :  { %v2105_v10 = vpop.xlane.xlu0 %2104 }
 0xeb5   :  { %5446 = vrsqrt.f32 %v2112_v9  ;;  %v2109_v12 = vmul.f32 0.03125, %v2105_v10 }
 0xeb7   :  { %v2111_v42 = vadd.f32 1e-12, %v2109_v12 }
 0xeb8   :  { %v2147_v13 = vpop.permute.xlu0 %2146 }
 0xeb9   :  { %5448 = vrsqrt.f32 %v2111_v42  ;;  %5128 = vmatprep.subr.mxu0 %v2147_v13 }
 0xeba   :  { %5129 = vmatpush3.msra.mxu0 %v2147_v13 }
 0xebb   :  { %5130 = vmatprep.subr.mxu0 %v2145_v11 }
 0xebc   :  { %5131 = vmatpush3.msra.mxu0 %v2145_v11 }
 0xebd   :  { %5132 = vmatprep.subr.mxu0 %v2143_v14 }
 0xebe   :  { %5133 = vmatpush3.msra.mxu0 %v2143_v14 }
 0xebf   :  { %5157 = vmatprep.subr.mxu0 %v5523_v0 }
 0xec2   :  { %v5447_v15 = vpop.eup %5446 }
 0xec3   :  { %v2116_v16 = vmul.f32 %v5447_v15, %v2100_v45 }
 0xec5   :  { %v2123_v40 = vmul.f32 %v4688_v17, %v2116_v16 }
 0xec6   :  { %v5449_v18 = vpop.eup %5448 }
 0xec7   :  { %v2115_v19 = vmul.f32 %v5449_v18, %v2099_v47  ;;  %v5935_v24 = vadd.f32 %v4689_v21, %v2123_v40 }
 0xec9   :  { %v2122_v20 = vmul.f32 %v4688_v17, %v2115_v19 }
 0xecb   :  { %v5931_v22 = vadd.f32 %v4689_v21, %v2122_v20 }
 0xecd   :  { %5134 = vmatprep.mubr.msk.f32.mxu0 %vm49_vm1, %v5931_v22 }
 0xece   :  { %5135 = vmatmul.mubr.msk.f32.vlgmr.msra.gmra.mxu0 %vm49_vm1, %v5935_v24 }
 0xecf   :  { %5158 = vmatpush3.xpose.msk.msra.mxu0 %vm409_vm3, %v5933_v23  ;;  %5165 = vmatprep.mubr.msk.f32.mxu0 %vm5524_vm0, %v5523_v0 }
 0xed0   :  { %5159 = vmatprep.subr.mxu0 %v5523_v0 }
 0xed3   :  { %5160 = vmatpush3.xpose.msk.msra.mxu0 %vm409_vm3, %v5941_v25 }
 0xed4   :  { %5161 = vmatprep.subr.mxu0 %v5523_v0 }
 0xed7   :  { %5162 = vmatpush3.xpose.msk.msra.mxu0 %vm409_vm3, %v5948_v26 }
 0xed8   :  { %5163 = vmatprep.subr.mxu0 %v5523_v0 }
 0xedb   :  { %5164 = vmatpush3.xpose.msk.msra.mxu0 %vm409_vm3, %v5902_v56 }
 0xedc   :  { %5179 = vmatprep.subr.mxu0 %v5523_v0 }
 0xf8e   :  { %v5136_v28 = vpop.f32.mrf.mxu0 }
 0xf8f   :  { %v5962_v29 = vadd.f32 %v5136_v28, %v4690_v27 }
 0xf90   :  { %v2226_v30 = vpop.f32.mrf.mxu0 }
 0xf91   :  { %v5964_v33 = vadd.f32 %v4690_v27, %v2226_v30  ;;  %5177 = vmatmul.mubr.msk.f32.vlgmr.msra.gmra.mxu1 %vm409_vm3, %v5962_v29 }
 0xf92   :  { %5198 = vmatprep.mubr.msk.f32.mxu1 %vm5524_vm0, %v5523_v0 }
 0xf93   :  { %5166 = vmatmul.mubr.msk.f32.vlgmr.msra.gmra.mxu0 %vm409_vm3, %v5964_v33 }
 0xf94   :  { %5187 = vmatprep.mubr.msk.f32.mxu0 %vm5524_vm0, %v5523_v0 }
0x1051   :  { %v2547_v32 = vpop.f32.mrf.mxu1 }
0x1052   :  { %v2552_v31 = vmul.f32 0.35355338, %v2547_v32 }
0x1053   :  { %v2462_v3 = vpop.f32.mrf.mxu0  ;;  %v5178_v7 = vpop.f32.mrf.mxu1 }
0x1054   :  { %v2551_v8 = vmul.f32 0.35355338, %v2462_v3  ;;  %v2556_v34 = vsel %vm49_vm1, %v2552_v31, -inf }
0x1055   :  { %2557 = vmax.xlane.f32.xlu1 %v2556_v34  ;;  %v5167_v35 = vpop.f32.mrf.mxu0 }
0x1056   :  { %v2553_v36 = vsel %vm49_vm1, %v2551_v8, -inf }
0x1057   :  { %2554 = vmax.xlane.f32.xlu0 %v2553_v36 }
0x1066   :  { %2581 = vrot.lane.b32.xlu1 %v5933_v23, %s5526_s15 }
0x106a   :  { %2579 = vrot.lane.b32.xlu1 %v5941_v25, %s5526_s15 }
0x106d   :  { %2666 = vrot.lane.b32.xlu0 %v5904_v1, %s5526_s15 }
0x106e   :  { %2664 = vrot.lane.b32.xlu1 %v5908_v6, %s5526_s15 }
0x1071   :  { %2577 = vrot.lane.b32.xlu0 %v5948_v26, %s5526_s15 }
0x1072   :  { %2662 = vrot.lane.b32.xlu1 %v5911_v2, %s5526_s15 }
0x1075   :  { %2575 = vrot.lane.b32.xlu0 %v5902_v56, %s5526_s15 }
0x1076   :  { %2660 = vrot.lane.b32.xlu1 %v5916_v4, %s5526_s15 }
0x1079   :  { %2754 = vrot.lane.b32.xlu0 %v5933_v23, %s5529_s17 }
0x107a   :  { %2844 = vrot.lane.b32.xlu1 %v5904_v1, %s5529_s17 }
0x107e   :  { %2842 = vrot.lane.b32.xlu1 %v5908_v6, %s5529_s17 }
0x1082   :  { %2840 = vrot.lane.b32.xlu1 %v5911_v2, %s5529_s17 }
0x1086   :  { %2838 = vrot.lane.b32.xlu1 %v5916_v4, %s5529_s17 }
0x108a   :  { %2836 = vrot.lane.b32.xlu1 %v5962_v29, %s5529_s17 }
0x10de   :  { %v2558_v37 = vpop.xlane.xlu1 %2557 }
0x10df   :  { %v2560_v38 = vsub.f32 %v2552_v31, %v2558_v37 }
0x10e0   :  { %v2555_v39 = vpop.xlane.xlu0 %2554 }
0x10e1   :  { %v2563_v41 = vmul.f32 1.442695, %v2560_v38  ;;  %v2559_v43 = vsub.f32 %v2551_v8, %v2555_v39 }
0x10e2   :  { %v2582_v44 = vpop.permute.xlu1 %2581 }
0x10e3   :  { %5450 = vpow2.f32 %v2563_v41  ;;  %v2561_v45 = vmul.f32 1.442695, %v2559_v43  ;;  %5180 = vmatpush3.msra.mxu0 %v2582_v44 }
0x10e4   :  { %v2667_v46 = vpop.permute.xlu0 %2666  ;;  %5181 = vmatprep.subr.mxu0 %v5523_v0 }
0x10e5   :  { %5452 = vpow2.f32 %v2561_v45  ;;  %5191 = vmatpush3.msra.mxu1 %v2667_v46 }
0x10e6   :  { %v2580_v47 = vpop.permute.xlu1 %2579  ;;  %5192 = vmatprep.subr.mxu1 %v5523_v0 }
0x10e7   :  { %5182 = vmatpush3.msra.mxu0 %v2580_v47 }
0x10e8   :  { %5183 = vmatprep.subr.mxu0 %v5523_v0  ;;  %v2578_v48 = vpop.permute.xlu0 %2577 }
0x10e9   :  { %5184 = vmatpush3.msra.mxu0 %v2578_v48 }
0x10ea   :  { %v2665_v49 = vpop.permute.xlu1 %2664  ;;  %5185 = vmatprep.subr.mxu0 %v5523_v0 }
0x10eb   :  { %5193 = vmatpush3.msra.mxu1 %v2665_v49 }
0x10ec   :  { %v2576_v50 = vpop.permute.xlu0 %2575  ;;  %5194 = vmatprep.subr.mxu1 %v5523_v0 }
0x10ed   :  { %5186 = vmatpush3.msra.mxu0 %v2576_v50 }
0x10ee   :  { %v2663_v51 = vpop.permute.xlu1 %2662  ;;  %5201 = vmatprep.subr.mxu0 %v5523_v0 }
0x10ef   :  { %5195 = vmatpush3.msra.mxu1 %v2663_v51  ;;  %v2745_v51 = vld [vmem:[%s6359_s3 + $0x20] sm:$0xff] }
0x10f0   :  { %v5451_v52 = vpop.eup %5450  ;;  %5196 = vmatprep.subr.mxu1 %v5523_v0  ;;  %v2755_v58 = vpop.permute.xlu0 %2754 }
0x10f1   :  { %v2568_v53 = vsel %vm49_vm1, %v5451_v52, 0.0 }
0x10f2   :  { %v5453_v54 = vpop.eup %5452  ;;  %v2661_v55 = vpop.permute.xlu1 %2660  ;;  %2569 = vadd.xlane.f32.xlu0 %v2568_v53 }
0x10f3   :  { %5197 = vmatpush3.msra.mxu1 %v2661_v55  ;;  %v2565_v57 = vsel %vm49_vm1, %v5453_v54, 0.0 }
0x10f4   :  { %5212 = vmatprep.subr.mxu1 %v5523_v0 }
0x10f6   :  { %2566 = vadd.xlane.f32.xlu0 %v2565_v57  ;;  %v2845_v63 = vpop.permute.xlu1 %2844 }
0x10fa   :  { %v2843_v61 = vpop.permute.xlu1 %2842 }
0x10fe   :  { %v2841_v12 = vpop.permute.xlu1 %2840 }
0x1102   :  { %v2839_v13 = vpop.permute.xlu1 %2838 }
0x1106   :  { %v2837_v15 = vpop.permute.xlu1 %2836 }
0x110c   :  { %2752 = vrot.lane.b32.xlu0 %v5941_v25, %s5529_s17 }
0x1110   :  { %2750 = vrot.lane.b32.xlu0 %v5948_v26, %s5529_s17 }
0x1114   :  { %2748 = vrot.lane.b32.xlu0 %v5902_v56, %s5529_s17 }
0x1118   :  { %2746 = vrot.lane.b32.xlu0 %v5964_v33, %s5529_s17 }
0x117b   :  { %v2570_v59 = vpop.xlane.xlu0 %2569 }
0x117c   :  { %5454 = vrcp.f32 %v2570_v59 }
0x117f   :  { %v2567_v62 = vpop.xlane.xlu0 %2566 }
0x1180   :  { %5456 = vrcp.f32 %v2567_v62 }
0x1183   :  { %v2753_v10 = vpop.permute.xlu0 %2752 }
0x1187   :  { %v2751_v42 = vpop.permute.xlu0 %2750 }
0x1189   :  { %v5455_v60 = vpop.eup %5454 }
0x118a   :  { %v2574_v5 = vmul.f32 %v5455_v60, %v5451_v52 }
0x118b   :  { %v2749_v14 = vpop.permute.xlu0 %2748 }
0x118c   :  { %5199 = vmatmul.mubr.msk.f32.vlgmr.msra.gmra.mxu1 %vm49_vm1, %v2574_v5 }
0x118d   :  { %v5457_v9 = vpop.eup %5456  ;;  %5213 = vmatpush3.xpose.msk.msra.mxu1 %vm409_vm3, %v2845_v63  ;;  %5220 = vmatprep.mubr.msk.f32.mxu1 %vm5524_vm0, %v5523_v0 }
0x118e   :  { %5214 = vmatprep.subr.mxu1 %v5523_v0  ;;  %v2573_v11 = vmul.f32 %v5457_v9, %v5453_v54  ;;  %v3120_v9 = vld [vmem:[%s6359_s3 + $0x48] sm:$0xff] }
0x118f   :  { %v2747_v16 = vpop.permute.xlu0 %2746 }
0x1190   :  { %5188 = vmatmul.mubr.msk.f32.vlgmr.msra.gmra.mxu0 %vm49_vm1, %v2573_v11 }
0x1191   :  { %5202 = vmatpush3.xpose.msk.msra.mxu0 %vm409_vm3, %v2755_v58  ;;  %5215 = vmatpush3.xpose.msk.msra.mxu1 %vm409_vm3, %v2843_v61 }
0x1192   :  { %5203 = vmatprep.subr.mxu0 %v5523_v0  ;;  %5216 = vmatprep.subr.mxu1 %v5523_v0 }
0x1193   :  { %5209 = vmatprep.mubr.msk.f32.mxu0 %vm5524_vm0, %v5523_v0 }
0x1195   :  { %5204 = vmatpush3.xpose.msk.msra.mxu0 %vm409_vm3, %v2753_v10  ;;  %5217 = vmatpush3.xpose.msk.msra.mxu1 %vm409_vm3, %v2841_v12 }
0x1196   :  { %5205 = vmatprep.subr.mxu0 %v5523_v0  ;;  %5218 = vmatprep.subr.mxu1 %v5523_v0 }
0x1199   :  { %5206 = vmatpush3.xpose.msk.msra.mxu0 %vm409_vm3, %v2751_v42  ;;  %5219 = vmatpush3.xpose.msk.msra.mxu1 %vm409_vm3, %v2839_v13 }
0x119a   :  { %5207 = vmatprep.subr.mxu0 %v5523_v0  ;;  %5234 = vmatprep.subr.mxu1 %v5523_v0 }
0x119c   :  { %5221 = vmatmul.mubr.msk.f32.vlgmr.msra.gmra.mxu1 %vm409_vm3, %v2837_v15 }
0x119d   :  { %5208 = vmatpush3.xpose.msk.msra.mxu0 %vm409_vm3, %v2749_v14  ;;  %5242 = vmatprep.mubr.msk.f32.mxu1 %vm5524_vm0, %v5523_v0 }
0x119e   :  { %5223 = vmatprep.subr.mxu0 %v5523_v0 }
0x11a0   :  { %5210 = vmatmul.mubr.msk.f32.vlgmr.msra.gmra.mxu0 %vm409_vm3, %v2747_v16 }
0x11a1   :  { %5231 = vmatprep.mubr.msk.f32.mxu0 %vm5524_vm0, %v5523_v0 }
0x124c   :  { %v6050_v17 = vpop.f32.mrf.mxu1 }
0x124e   :  { %v5200_v18 = vpop.f32.mrf.mxu1 }
0x1250   :  { %v6052_v19 = vpop.f32.mrf.mxu0 }
0x1252   :  { %v5189_v40 = vpop.f32.mrf.mxu0 }
0x125c   :  { %v2922_v20 = vpop.f32.mrf.mxu1 }
0x125d   :  { %v2927_v21 = vmul.f32 0.35355338, %v2922_v20 }
0x125e   :  { %v5222_v27 = vpop.f32.mrf.mxu1 }
0x125f   :  { %v2931_v28 = vsel %vm49_vm1, %v2927_v21, -inf }
0x1260   :  { %2932 = vmax.xlane.f32.xlu1 %v2931_v28  ;;  %v2832_v30 = vpop.f32.mrf.mxu0 }
0x1261   :  { %v2926_v32 = vmul.f32 0.35355338, %v2832_v30 }
0x1262   :  { %v5211_v31 = vpop.f32.mrf.mxu0 }
0x1263   :  { %v2928_v3 = vsel %vm49_vm1, %v2926_v32, -inf }
0x1264   :  { %2929 = vmax.xlane.f32.xlu0 %v2928_v3 }
0x1271   :  { %2956 = vrot.lane.b32.xlu1 %v5933_v23, %s5528_s16 }
0x1275   :  { %2954 = vrot.lane.b32.xlu1 %v5941_v25, %s5528_s16 }
0x1279   :  { %3039 = vrot.lane.b32.xlu1 %v5908_v6, %s5528_s16 }
0x127a   :  { %3041 = vrot.lane.b32.xlu0 %v5904_v1, %s5528_s16 }
0x127d   :  { %3037 = vrot.lane.b32.xlu1 %v5911_v2, %s5528_s16 }
0x127e   :  { %2952 = vrot.lane.b32.xlu0 %v5948_v26, %s5528_s16 }
0x1281   :  { %3035 = vrot.lane.b32.xlu1 %v5916_v4, %s5528_s16 }
0x1285   :  { %3381 = vrot.lane.b32.xlu1 %v5904_v1, %s5532_s20 }
0x1289   :  { %3379 = vrot.lane.b32.xlu1 %v5908_v6, %s5532_s20 }
0x128d   :  { %3377 = vrot.lane.b32.xlu1 %v5911_v2, %s5532_s20 }
0x1291   :  { %3375 = vrot.lane.b32.xlu1 %v5916_v4, %s5532_s20 }
0x1295   :  { %3373 = vrot.lane.b32.xlu1 %v5962_v29, %s5532_s20 }
0x12e9   :  { %v2933_v7 = vpop.xlane.xlu1 %2932 }
0x12ea   :  { %v2935_v8 = vsub.f32 %v2927_v21, %v2933_v7 }
0x12ec   :  { %v2938_v34 = vmul.f32 1.442695, %v2935_v8 }
0x12ed   :  { %v2957_v35 = vpop.permute.xlu1 %2956  ;;  %v2930_v36 = vpop.xlane.xlu0 %2929 }
0x12ee   :  { %5458 = vpow2.f32 %v2938_v34  ;;  %v2934_v37 = vsub.f32 %v2926_v32, %v2930_v36  ;;  %5224 = vmatpush3.msra.mxu0 %v2957_v35 }
0x12ef   :  { %5225 = vmatprep.subr.mxu0 %v5523_v0 }
0x12f0   :  { %v2936_v38 = vmul.f32 1.442695, %v2934_v37 }
0x12f1   :  { %v2955_v39 = vpop.permute.xlu1 %2954  ;;  %v3042_v41 = vpop.permute.xlu0 %3041 }
0x12f2   :  { %5460 = vpow2.f32 %v2936_v38  ;;  %5226 = vmatpush3.msra.mxu0 %v2955_v39  ;;  %5235 = vmatpush3.msra.mxu1 %v3042_v41 }
0x12f3   :  { %5227 = vmatprep.subr.mxu0 %v5523_v0  ;;  %5236 = vmatprep.subr.mxu1 %v5523_v0 }
0x12f5   :  { %v3040_v43 = vpop.permute.xlu1 %3039  ;;  %v2953_v44 = vpop.permute.xlu0 %2952 }
0x12f6   :  { %5228 = vmatpush3.msra.mxu0 %v2953_v44  ;;  %5237 = vmatpush3.msra.mxu1 %v3040_v43 }
0x12f7   :  { %5238 = vmatprep.subr.mxu1 %v5523_v0  ;;  %5229 = vmatprep.subr.mxu0 %v5523_v0 }
0x12f9   :  { %v3038_v45 = vpop.permute.xlu1 %3037 }
0x12fa   :  { %5239 = vmatpush3.msra.mxu1 %v3038_v45 }
0x12fb   :  { %v5459_v46 = vpop.eup %5458  ;;  %5240 = vmatprep.subr.mxu1 %v5523_v0 }
0x12fc   :  { %v2943_v47 = vsel %vm49_vm1, %v5459_v46, 0.0 }
0x12fd   :  { %v3036_v48 = vpop.permute.xlu1 %3035  ;;  %2944 = vadd.xlane.f32.xlu0 %v2943_v47 }
0x12fe   :  { %5241 = vmatpush3.msra.mxu1 %v3036_v48 }
0x12ff   :  { %v5461_v49 = vpop.eup %5460  ;;  %5250 = vmatprep.subr.mxu1 %v2745_v51 }
0x1300   :  { %v2940_v50 = vsel %vm49_vm1, %v5461_v49, 0.0 }
0x1301   :  { %2941 = vadd.xlane.f32.xlu0 %v2940_v50  ;;  %v3382_v55 = vpop.permute.xlu1 %3381 }
0x1305   :  { %v3380_v62 = vpop.permute.xlu1 %3379 }
0x1309   :  { %v3378_v60 = vpop.permute.xlu1 %3377 }
0x130d   :  { %v3376_v61 = vpop.permute.xlu1 %3375 }
0x1311   :  { %v3374_v5 = vpop.permute.xlu1 %3373 }
0x1317   :  { %2950 = vrot.lane.b32.xlu0 %v5902_v56, %s5528_s16 }
0x131b   :  { %3291 = vrot.lane.b32.xlu0 %v5933_v23, %s5532_s20 }
0x131f   :  { %3289 = vrot.lane.b32.xlu0 %v5941_v25, %s5532_s20 }
0x1323   :  { %3287 = vrot.lane.b32.xlu0 %v5948_v26, %s5532_s20 }
0x1327   :  { %3285 = vrot.lane.b32.xlu0 %v5902_v56, %s5532_s20 }
0x132b   :  { %3283 = vrot.lane.b32.xlu0 %v5964_v33, %s5532_s20 }
0x1386   :  { %v2945_v52 = vpop.xlane.xlu0 %2944 }
0x1387   :  { %5462 = vrcp.f32 %v2945_v52 }
0x138a   :  { %v2942_v53 = vpop.xlane.xlu0 %2941 }
0x138b   :  { %5464 = vrcp.f32 %v2942_v53 }
0x138e   :  { %v2951_v54 = vpop.permute.xlu0 %2950 }
0x138f   :  { %5230 = vmatpush3.msra.mxu0 %v2951_v54 }
0x1390   :  { %5245 = vmatprep.subr.mxu0 %v3120_v9 }
0x1392   :  { %v3292_v10 = vpop.permute.xlu0 %3291 }
0x1394   :  { %v5463_v57 = vpop.eup %5462 }
0x1395   :  { %v2949_v58 = vmul.f32 %v5463_v57, %v5459_v46 }
0x1396   :  { %v3290_v42 = vpop.permute.xlu0 %3289 }
0x1397   :  { %5243 = vmatmul.mubr.msk.f32.vlgmr.msra.gmra.mxu1 %vm49_vm1, %v2949_v58 }
0x1398   :  { %v5465_v59 = vpop.eup %5464  ;;  %5252 = vmatprep.mubr.msk.f32.mxu1 %vm409_vm3, %v6052_v19  ;;  %5251 = vmatpush3.msra.mxu1 %v2745_v51 }
0x1399   :  { %5266 = vmatprep.subr.mxu1 %v5523_v0  ;;  %v2948_v63 = vmul.f32 %v5465_v59, %v5461_v49 }
0x139a   :  { %v3288_v15 = vpop.permute.xlu0 %3287 }
0x139b   :  { %5232 = vmatmul.mubr.msk.f32.vlgmr.msra.gmra.mxu0 %vm49_vm1, %v2948_v63  ;;  %5253 = vmatmul.mubr.msk.f32.vlgmr.msra.gmra.mxu1 %vm409_vm3, %v6050_v17 }
0x139c   :  { %5267 = vmatpush3.xpose.msk.msra.mxu1 %vm409_vm3, %v3382_v55  ;;  %5274 = vmatprep.mubr.msk.f32.mxu1 %vm5524_vm0, %v5523_v0  ;;  %v3657_v55 = vld [vmem:[%s6359_s3 + $0x70] sm:$0xff] }
0x139d   :  { %5268 = vmatprep.subr.mxu1 %v5523_v0  ;;  %5246 = vmatpush3.msra.mxu0 %v3120_v9 }
0x139e   :  { %5255 = vmatprep.subr.mxu0 %v5523_v0  ;;  %v3286_v17 = vpop.permute.xlu0 %3285 }
0x13a0   :  { %5269 = vmatpush3.xpose.msk.msra.mxu1 %vm409_vm3, %v3380_v62 }
0x13a1   :  { %5270 = vmatprep.subr.mxu1 %v5523_v0 }
0x13a2   :  { %v3284_v40 = vpop.permute.xlu0 %3283 }
0x13a4   :  { %5271 = vmatpush3.xpose.msk.msra.mxu1 %vm409_vm3, %v3378_v60 }
0x13a5   :  { %5272 = vmatprep.subr.mxu1 %v5523_v0 }
0x13a8   :  { %5273 = vmatpush3.xpose.msk.msra.mxu1 %vm409_vm3, %v3376_v61 }
0x13a9   :  { %5288 = vmatprep.subr.mxu1 %v5523_v0 }
0x13ab   :  { %5275 = vmatmul.mubr.msk.f32.vlgmr.msra.gmra.mxu1 %vm409_vm3, %v3374_v5 }
0x13ac   :  { %5296 = vmatprep.mubr.msk.f32.mxu1 %vm5524_vm0, %v5523_v0 }
0x1457   :  { %v3116_v11 = vpop.f32.mrf.mxu1 }
0x1459   :  { %v5244_v12 = vpop.f32.mrf.mxu1 }
0x145b   :  { %v3031_v13 = vpop.f32.mrf.mxu0  ;;  %v6135_v16 = vpop.f32.mrf.mxu1 }
0x145c   :  { %5247 = vmatprep.mubr.msk.f32.mxu0 %vm409_vm3, %v3031_v13 }
0x145d   :  { %v5233_v14 = vpop.f32.mrf.mxu0  ;;  %5248 = vmatmul.mubr.msk.f32.vlgmr.msra.gmra.mxu0 %vm409_vm3, %v3116_v11  ;;  %v6139_v18 = vpop.f32.mrf.mxu1 }
0x145e   :  { %5256 = vmatpush3.xpose.msk.msra.mxu0 %vm409_vm3, %v3292_v10  ;;  %5263 = vmatprep.mubr.msk.f32.mxu0 %vm5524_vm0, %v5523_v0 }
0x145f   :  { %5257 = vmatprep.subr.mxu0 %v5523_v0 }
0x1462   :  { %5258 = vmatpush3.xpose.msk.msra.mxu0 %vm409_vm3, %v3290_v42 }
0x1463   :  { %5259 = vmatprep.subr.mxu0 %v5523_v0 }
0x1466   :  { %5260 = vmatpush3.xpose.msk.msra.mxu0 %vm409_vm3, %v3288_v15 }
0x1467   :  { %5261 = vmatprep.subr.mxu0 %v5523_v0 }
0x146a   :  { %5262 = vmatpush3.xpose.msk.msra.mxu0 %vm409_vm3, %v3286_v17 }
0x146b   :  { %v3459_v19 = vpop.f32.mrf.mxu1  ;;  %5277 = vmatprep.subr.mxu0 %v5523_v0 }
0x146c   :  { %v3464_v20 = vmul.f32 0.35355338, %v3459_v19 }
0x146d   :  { %5264 = vmatmul.mubr.msk.f32.vlgmr.msra.gmra.mxu0 %vm409_vm3, %v3284_v40  ;;  %v5276_v21 = vpop.f32.mrf.mxu1 }
0x146e   :  { %v3468_v27 = vsel %vm49_vm1, %v3464_v20, -inf  ;;  %5285 = vmatprep.mubr.msk.f32.mxu0 %vm5524_vm0, %v5523_v0 }
0x146f   :  { %3469 = vmax.xlane.f32.xlu1 %v3468_v27 }
0x1480   :  { %3493 = vrot.lane.b32.xlu1 %v5933_v23, %s5531_s19 }
0x1484   :  { %3491 = vrot.lane.b32.xlu1 %v5941_v25, %s5531_s19 }
0x1488   :  { %3576 = vrot.lane.b32.xlu1 %v5908_v6, %s5531_s19 }
0x148c   :  { %3574 = vrot.lane.b32.xlu1 %v5911_v2, %s5531_s19 }
0x1490   :  { %3572 = vrot.lane.b32.xlu1 %v5916_v4, %s5531_s19 }
0x1494   :  { %3839 = vrot.lane.b32.xlu1 %v5904_v1, %s5535_s23 }
0x1498   :  { %3837 = vrot.lane.b32.xlu1 %v5908_v6, %s5535_s23 }
0x149c   :  { %3835 = vrot.lane.b32.xlu1 %v5911_v2, %s5535_s23 }
0x14a0   :  { %3833 = vrot.lane.b32.xlu1 %v5916_v4, %s5535_s23 }
0x14a4   :  { %3831 = vrot.lane.b32.xlu1 %v5962_v29, %s5535_s23 }
0x14f8   :  { %v3470_v28 = vpop.xlane.xlu1 %3469 }
0x14f9   :  { %v3472_v31 = vsub.f32 %v3464_v20, %v3470_v28 }
0x14fb   :  { %v3475_v3 = vmul.f32 1.442695, %v3472_v31 }
0x14fc   :  { %v3494_v30 = vpop.permute.xlu1 %3493 }
0x14fd   :  { %5278 = vmatpush3.msra.mxu0 %v3494_v30  ;;  %5466 = vpow2.f32 %v3475_v3 }
0x14fe   :  { %5279 = vmatprep.subr.mxu0 %v5523_v0 }
0x1500   :  { %v3492_v32 = vpop.permute.xlu1 %3491 }
0x1501   :  { %5280 = vmatpush3.msra.mxu0 %v3492_v32 }
0x1502   :  { %5281 = vmatprep.subr.mxu0 %v5523_v0 }
0x1504   :  { %v3577_v43 = vpop.permute.xlu1 %3576 }
0x1508   :  { %v3575_v46 = vpop.permute.xlu1 %3574 }
0x150a   :  { %v5467_v37 = vpop.eup %5466 }
0x150b   :  { %v3480_v38 = vsel %vm49_vm1, %v5467_v37, 0.0 }
0x150c   :  { %v3573_v49 = vpop.permute.xlu1 %3572 }
0x1510   :  { %v3840_v10 = vpop.permute.xlu1 %3839 }
0x1514   :  { %v3838_v11 = vpop.permute.xlu1 %3837 }
0x1518   :  { %v3836_v13 = vpop.permute.xlu1 %3835 }
0x151c   :  { %v3834_v19 = vpop.permute.xlu1 %3833 }
0x151d   :  { %v6169_v7 = vpop.f32.mrf.mxu0 }
0x151e   :  { %v3280_v31 = vadd.f32 %v6135_v16, %v6169_v7 }
0x151f   :  { %v6171_v8 = vpop.f32.mrf.mxu0 }
0x1520   :  { %v3832_v20 = vpop.permute.xlu1 %3831 }
0x152d   :  { %v3369_v34 = vpop.f32.mrf.mxu0 }
0x152e   :  { %v3463_v35 = vmul.f32 0.35355338, %v3369_v34  ;;  %v3275_v34 = vadd.f32 %v6139_v18, %v6171_v8 }
0x152f   :  { %v5265_v36 = vpop.f32.mrf.mxu0 }
0x1530   :  { %v3465_v29 = vsel %vm49_vm1, %v3463_v35, -inf }
0x1531   :  { %3466 = vmax.xlane.f32.xlu0 %v3465_v29 }
0x1535   :  { %3481 = vadd.xlane.f32.xlu0 %v3480_v38 }
0x154b   :  { %3578 = vrot.lane.b32.xlu0 %v5904_v1, %s5531_s19 }
0x154f   :  { %3489 = vrot.lane.b32.xlu0 %v5948_v26, %s5531_s19 }
0x15ba   :  { %v3467_v39 = vpop.xlane.xlu0 %3466 }
0x15bb   :  { %v3471_v41 = vsub.f32 %v3463_v35, %v3467_v39 }
0x15bd   :  { %v3473_v44 = vmul.f32 1.442695, %v3471_v41 }
0x15be   :  { %v3482_v45 = vpop.xlane.xlu0 %3481 }
0x15bf   :  { %5468 = vpow2.f32 %v3473_v44 }
0x15c0   :  { %5470 = vrcp.f32 %v3482_v45 }
0x15c2   :  { %v3579_v47 = vpop.permute.xlu0 %3578 }
0x15c3   :  { %5289 = vmatpush3.msra.mxu1 %v3579_v47 }
0x15c4   :  { %5290 = vmatprep.subr.mxu1 %v5523_v0 }
0x15c5   :  { %5291 = vmatpush3.msra.mxu1 %v3577_v43 }
0x15c6   :  { %5292 = vmatprep.subr.mxu1 %v5523_v0  ;;  %v3490_v48 = vpop.permute.xlu0 %3489 }
0x15c7   :  { %5282 = vmatpush3.msra.mxu0 %v3490_v48  ;;  %5293 = vmatpush3.msra.mxu1 %v3575_v46 }
0x15c8   :  { %5294 = vmatprep.subr.mxu1 %v5523_v0  ;;  %5283 = vmatprep.subr.mxu0 %v5523_v0 }
0x15c9   :  { %5295 = vmatpush3.msra.mxu1 %v3573_v49 }
0x15ca   :  { %5304 = vmatprep.subr.mxu1 %v5523_v0 }
0x15cc   :  { %v5469_v50 = vpop.eup %5468 }
0x15cd   :  { %v5471_v51 = vpop.eup %5470  ;;  %v3477_v52 = vsel %vm49_vm1, %v5469_v50, 0.0 }
0x15ce   :  { %3478 = vadd.xlane.f32.xlu0 %v3477_v52  ;;  %v3486_v53 = vmul.f32 %v5471_v51, %v5467_v37 }
0x15d0   :  { %5297 = vmatmul.mubr.msk.f32.vlgmr.msra.gmra.mxu1 %vm49_vm1, %v3486_v53 }
0x15d1   :  { %5312 = vmatprep.mubr.msk.f32.mxu1 %vm5524_vm0, %v5523_v0 }
0x15e4   :  { %3487 = vrot.lane.b32.xlu0 %v5902_v56, %s5531_s19 }
0x15e8   :  { %3749 = vrot.lane.b32.xlu0 %v5933_v23, %s5535_s23 }
0x15ec   :  { %3747 = vrot.lane.b32.xlu0 %v5941_v25, %s5535_s23 }
0x15f0   :  { %3745 = vrot.lane.b32.xlu0 %v5948_v26, %s5535_s23 }
0x15f4   :  { %3743 = vrot.lane.b32.xlu0 %v5902_v56, %s5535_s23 }
0x15f8   :  { %3741 = vrot.lane.b32.xlu0 %v5964_v33, %s5535_s23 }
0x1657   :  { %v3479_v54 = vpop.xlane.xlu0 %3478 }
0x1658   :  { %5472 = vrcp.f32 %v3479_v54 }
0x165b   :  { %v3488_v57 = vpop.permute.xlu0 %3487 }
0x165c   :  { %5284 = vmatpush3.msra.mxu0 %v3488_v57 }
0x165d   :  { %5299 = vmatprep.subr.mxu0 %v3657_v55 }
0x165f   :  { %v3750_v58 = vpop.permute.xlu0 %3749 }
0x1660   :  { %5305 = vmatpush3.xpose.msk.msra.mxu1 %vm409_vm3, %v3750_v58 }
0x1661   :  { %5306 = vmatprep.subr.mxu1 %v5523_v0 }
0x1663   :  { %v3748_v59 = vpop.permute.xlu0 %3747 }
0x1664   :  { %5307 = vmatpush3.xpose.msk.msra.mxu1 %vm409_vm3, %v3748_v59 }
0x1665   :  { %v5473_v62 = vpop.eup %5472  ;;  %5308 = vmatprep.subr.mxu1 %v5523_v0 }
0x1666   :  { %v3485_v33 = vmul.f32 %v5473_v62, %v5469_v50 }
0x1667   :  { %v3746_v63 = vpop.permute.xlu0 %3745 }
0x1668   :  { %5286 = vmatmul.mubr.msk.f32.vlgmr.msra.gmra.mxu0 %vm49_vm1, %v3485_v33  ;;  %5309 = vmatpush3.xpose.msk.msra.mxu1 %vm409_vm3, %v3746_v63 }
0x1669   :  { %5310 = vmatprep.subr.mxu1 %v5523_v0  ;;  %5300 = vmatpush3.msra.mxu0 %v3657_v55  ;;  %v4758_v55 = vld [vmem:[%s6361_s5 + $0x7] ss:$0 sm:$0xff] }
0x166a   :  { %5315 = vmatprep.subr.mxu0 %v5523_v0 }
0x166b   :  { %v3744_v60 = vpop.permute.xlu0 %3743 }
0x166c   :  { %5311 = vmatpush3.xpose.msk.msra.mxu1 %vm409_vm3, %v3744_v60 }
0x166d   :  { %5326 = vmatprep.subr.mxu1 %v5523_v0 }
0x166f   :  { %v3742_v61 = vpop.permute.xlu0 %3741 }
0x1670   :  { %5313 = vmatmul.mubr.msk.f32.vlgmr.msra.gmra.mxu1 %vm409_vm3, %v3742_v61 }
0x1671   :  { %5334 = vmatprep.mubr.msk.f32.mxu1 %vm5524_vm0, %v5523_v0 }
0x1690   :  { %v3653_v5 = vpop.f32.mrf.mxu1 }
0x1692   :  { %v5298_v9 = vpop.f32.mrf.mxu1 }
0x1693   :  { %v4251_v9 = vld [vmem:[%s6359_s3 + $0x88] sm:$0xff] }
0x1728   :  { %v3568_v12 = vpop.f32.mrf.mxu0 }
0x1729   :  { %5301 = vmatprep.mubr.msk.f32.mxu0 %vm409_vm3, %v3568_v12 }
0x172a   :  { %v5287_v42 = vpop.f32.mrf.mxu0  ;;  %5302 = vmatmul.mubr.msk.f32.vlgmr.msra.gmra.mxu0 %vm409_vm3, %v3653_v5 }
0x172b   :  { %5316 = vmatpush3.xpose.msk.msra.mxu0 %vm409_vm3, %v3840_v10  ;;  %5323 = vmatprep.mubr.msk.f32.mxu0 %vm5524_vm0, %v5523_v0  ;;  %v4249_v10 = vld [vmem:[%s6359_s3 + $0x38] sm:$0xff] }
0x172c   :  { %5317 = vmatprep.subr.mxu0 %v5523_v0 }
0x172f   :  { %5318 = vmatpush3.xpose.msk.msra.mxu0 %vm409_vm3, %v3838_v11 }
0x1730   :  { %v3827_v14 = vpop.f32.mrf.mxu1  ;;  %5319 = vmatprep.subr.mxu0 %v5523_v0 }
0x1731   :  { %v3921_v15 = vmul.f32 0.35355338, %v3827_v14 }
0x1732   :  { %v5314_v17 = vpop.f32.mrf.mxu1 }
0x1733   :  { %5320 = vmatpush3.xpose.msk.msra.mxu0 %vm409_vm3, %v3836_v13  ;;  %v3923_v40 = vsel %vm49_vm1, %v3921_v15, -inf }
0x1734   :  { %3924 = vmax.xlane.f32.xlu0 %v3923_v40  ;;  %5321 = vmatprep.subr.mxu0 %v5523_v0 }
0x1737   :  { %5322 = vmatpush3.xpose.msk.msra.mxu0 %vm409_vm3, %v3834_v19 }
0x1738   :  { %5337 = vmatprep.subr.mxu0 %v5523_v0 }
0x173a   :  { %5324 = vmatmul.mubr.msk.f32.vlgmr.msra.gmra.mxu0 %vm409_vm3, %v3832_v20 }
0x173b   :  { %5345 = vmatprep.mubr.msk.f32.mxu0 %vm5524_vm0, %v5523_v0 }
0x17bd   :  { %v3925_v21 = vpop.xlane.xlu0 %3924 }
0x17be   :  { %v3929_v27 = vsub.f32 %v3921_v15, %v3925_v21  ;;  %v4250_v21 = vld [vmem:[%s6359_s3 + $0x60] sm:$0xff] }
0x17c0   :  { %v3931_v28 = vmul.f32 1.442695, %v3929_v27 }
0x17c2   :  { %5474 = vpow2.f32 %v3931_v28 }
0x17cf   :  { %v5475_v30 = vpop.eup %5474 }
0x17d0   :  { %v3935_v32 = vsel %vm49_vm1, %v5475_v30, 0.0 }
0x17d1   :  { %3936 = vadd.xlane.f32.xlu0 %v3935_v32 }
0x17e7   :  { %4036 = vrot.lane.b32.xlu0 %v5904_v1, %s5534_s22 }
0x17ea   :  { %v5303_v3 = vpop.f32.mrf.mxu0 }
0x17eb   :  { %v6239_v35 = vadd.f32 %v5303_v3, %v3280_v31  ;;  %3947 = vrot.lane.b32.xlu0 %v5948_v26, %s5534_s22 }
0x17ec   :  { %v3730_v36 = vpop.f32.mrf.mxu0 }
0x17ed   :  { %v6243_v29 = vadd.f32 %v3730_v36, %v3275_v34 }
0x17fa   :  { %v3917_v37 = vpop.f32.mrf.mxu0 }
0x17fb   :  { %v3922_v38 = vmul.f32 0.35355338, %v3917_v37 }
0x17fc   :  { %v5325_v39 = vpop.f32.mrf.mxu0 }
0x17fd   :  { %v3926_v1 = vsel %vm49_vm1, %v3922_v38, -inf }
0x17fe   :  { %3927 = vmax.xlane.f32.xlu1 %v3926_v1 }
0x180f   :  { %3951 = vrot.lane.b32.xlu1 %v5933_v23, %s5534_s22 }
0x1813   :  { %3949 = vrot.lane.b32.xlu1 %v5941_v25, %s5534_s22 }
0x1817   :  { %4034 = vrot.lane.b32.xlu1 %v5908_v6, %s5534_s22 }
0x181b   :  { %4032 = vrot.lane.b32.xlu1 %v5911_v2, %s5534_s22 }
0x181f   :  { %4030 = vrot.lane.b32.xlu1 %v5916_v4, %s5534_s22 }
0x185a   :  { %v3937_v26 = vpop.xlane.xlu0 %3936 }
0x185e   :  { %v4037_v16 = vpop.permute.xlu0 %4036 }
0x185f   :  { %5338 = vmatpush3.msra.mxu0 %v4037_v16 }
0x1860   :  { %5339 = vmatprep.subr.mxu0 %v5523_v0 }
0x1862   :  { %v3948_v25 = vpop.permute.xlu0 %3947 }
0x1887   :  { %v3928_v18 = vpop.xlane.xlu1 %3927 }
0x1888   :  { %v3930_v7 = vsub.f32 %v3922_v38, %v3928_v18  ;;  %v4759_v38 = vld [vmem:[%s6361_s5 + $0x8] ss:$0 sm:$0xff]  ;;  %v4760_v18 = vld [vmem:[%s6361_s5 + $0x9] ss:$0 sm:$0xff] }
0x188a   :  { %v3933_v23 = vmul.f32 1.442695, %v3930_v7 }
0x188b   :  { %v3952_v8 = vpop.permute.xlu1 %3951 }
0x188c   :  { %5476 = vpow2.f32 %v3933_v23  ;;  %5327 = vmatpush3.msra.mxu1 %v3952_v8  ;;  %v4415_v8 = vld [vmem:[#allocation2 + $0x78] sm:$0xff] }
0x188d   :  { %5328 = vmatprep.subr.mxu1 %v5523_v0  ;;  %5478 = vrcp.f32 %v3937_v26 }
0x188f   :  { %v3950_v6 = vpop.permute.xlu1 %3949 }
0x1890   :  { %5329 = vmatpush3.msra.mxu1 %v3950_v6  ;;  %v4414_v6 = vld [vmem:[#allocation2 + $0x68] sm:$0xff] }
0x1891   :  { %5330 = vmatprep.subr.mxu1 %v5523_v0 }
0x1892   :  { %5331 = vmatpush3.msra.mxu1 %v3948_v25  ;;  %v4413_v25 = vld [vmem:[#allocation2 + $0x58] sm:$0xff] }
0x1893   :  { %v4035_v2 = vpop.permute.xlu1 %4034  ;;  %5332 = vmatprep.subr.mxu1 %v5523_v0 }
0x1894   :  { %5340 = vmatpush3.msra.mxu0 %v4035_v2  ;;  %v4412_v2 = vld [vmem:[#allocation2 + $0x48] sm:$0xff] }
0x1895   :  { %5341 = vmatprep.subr.mxu0 %v5523_v0 }
0x1897   :  { %v4033_v4 = vpop.permute.xlu1 %4032 }
0x1898   :  { %5342 = vmatpush3.msra.mxu0 %v4033_v4  ;;  %v4411_v4 = vld [vmem:[#allocation2 + $0x38] sm:$0xff] }
0x1899   :  { %v5477_v41 = vpop.eup %5476  ;;  %5343 = vmatprep.subr.mxu0 %v5523_v0  ;;  %v4115_v0 = vld [vmem:[%s6359_s3 + $0x98] sm:$0xff] }
0x189a   :  { %v3938_v43 = vsel %vm49_vm1, %v5477_v41, 0.0  ;;  %v5479_v46 = vpop.eup %5478 }
0x189b   :  { %3939 = vadd.xlane.f32.xlu0 %v3938_v43  ;;  %v4031_v44 = vpop.permute.xlu1 %4030  ;;  %v3943_v48 = vmul.f32 %v5479_v46, %v5475_v30  ;;  %v4409_v43 = vld [vmem:[#allocation2 + $0x18] sm:$0xff] }
0x189c   :  { %5344 = vmatpush3.msra.mxu0 %v4031_v44  ;;  %v4408_v44 = vld [vmem:[#allocation2 + $0x8] sm:$0xff] }
0x18b1   :  { %3945 = vrot.lane.b32.xlu0 %v5902_v56, %s5534_s22 }
0x1924   :  { %v3940_v45 = vpop.xlane.xlu0 %3939 }
0x1925   :  { %5480 = vrcp.f32 %v3940_v45  ;;  %v4761_v45 = vld [vmem:[%s6361_s5 + $0xa] ss:$0 sm:$0xff] }
0x1928   :  { %v3946_v47 = vpop.permute.xlu0 %3945 }
0x1929   :  { %5333 = vmatpush3.msra.mxu1 %v3946_v47 }
0x192a   :  { %5335 = vmatmul.mubr.msk.f32.vlgmr.msra.gmra.mxu1 %vm49_vm1, %v3943_v48  ;;  %5348 = vmatprep.subr.mxu1 %v4115_v0 }
0x192b   :  { %5349 = vmatpush3.msra.mxu1 %v4115_v0 }
0x192c   :  { %5364 = vmatprep.subr.mxu1 %v4415_v8 }
0x1932   :  { %v5481_v49 = vpop.eup %5480 }
0x1933   :  { %v3944_v50 = vmul.f32 %v5481_v49, %v5477_v41  ;;  %v4410_v41 = vld [vmem:[#allocation2 + $0x28] sm:$0xff] }
0x1935   :  { %5346 = vmatmul.mubr.msk.f32.vlgmr.msra.gmra.mxu0 %vm49_vm1, %v3944_v50 }
0x19ea   :  { %v4026_v56 = vpop.f32.mrf.mxu1 }
0x19eb   :  { %5350 = vmatprep.mubr.msk.f32.mxu1 %vm409_vm3, %v4026_v56 }
0x19ec   :  { %v5336_v51 = vpop.f32.mrf.mxu1 }
0x19f5   :  { %v4111_v52 = vpop.f32.mrf.mxu0 }
0x19f6   :  { %5351 = vmatmul.mubr.msk.f32.vlgmr.msra.gmra.mxu1 %vm409_vm3, %v4111_v52 }
0x19f7   :  { %v5347_v53 = vpop.f32.mrf.mxu0  ;;  %5365 = vmatpush3.msra.mxu1 %v4415_v8 }
0x19f8   :  { %5366 = vmatprep.subr.mxu1 %v4414_v6 }
0x19f9   :  { %5367 = vmatpush3.msra.mxu1 %v4414_v6 }
0x19fa   :  { %5368 = vmatprep.subr.mxu1 %v4413_v25 }
0x19fb   :  { %5369 = vmatpush3.msra.mxu1 %v4413_v25  ;;  %v4764_v25 = vld [vmem:[%s6361_s5 + $0xb] ss:$0 sm:$0xff] }
0x19fc   :  { %5370 = vmatprep.subr.mxu1 %v4412_v2 }
0x19fd   :  { %5371 = vmatpush3.msra.mxu1 %v4412_v2 }
0x19fe   :  { %5372 = vmatprep.subr.mxu1 %v4411_v4 }
0x19ff   :  { %5373 = vmatpush3.msra.mxu1 %v4411_v4 }
0x1a00   :  { %5374 = vmatprep.subr.mxu1 %v4410_v41 }
0x1a01   :  { %5375 = vmatpush3.msra.mxu1 %v4410_v41 }
0x1a02   :  { %5376 = vmatprep.subr.mxu1 %v4409_v43 }
0x1a03   :  { %5377 = vmatpush3.msra.mxu1 %v4409_v43 }
0x1a04   :  { %5378 = vmatprep.subr.mxu1 %v4408_v44 }
0x1a05   :  { %5379 = vmatpush3.msra.mxu1 %v4408_v44 }
0x1ab6   :  { %v5352_v54 = vpop.f32.mrf.mxu1 }
0x1ab7   :  { %v4198_v57 = vadd.f32 %v5352_v54, %v6239_v35 }
0x1ab8   :  { %v4188_v58 = vpop.f32.mrf.mxu1 }
0x1ab9   :  { %v4205_v59 = vadd.f32 %v4758_v55, %v4198_v57  ;;  %v4197_v62 = vadd.f32 %v4188_v58, %v6243_v29 }
0x1abb   :  { %v4204_v33 = vadd.f32 %v4758_v55, %v4197_v62  ;;  %v4207_v63 = vadd.f32 %v4205_v59, %v5935_v24 }
0x1abd   :  { %v4211_v60 = vsel %vm49_vm1, %v4207_v63, 0.0  ;;  %v4206_v61 = vadd.f32 %v4204_v33, %v5931_v22  ;;  %v4248_v22 = vld [vmem:[%s6359_s3 + $0x10] sm:$0xff] }
0x1abe   :  { %4212 = vadd.xlane.f32.xlu1 %v4211_v60 }
0x1abf   :  { %v4208_v5 = vsel %vm49_vm1, %v4206_v61, 0.0 }
0x1ac0   :  { %4209 = vadd.xlane.f32.xlu0 %v4208_v5 }
0x1acf   :  { %4267 = vrot.lane.b32.xlu1 %v4251_v9, %s5527_s6 }
0x1ad3   :  { %4263 = vrot.lane.b32.xlu1 %v4249_v10, %s5527_s6 }
0x1ad7   :  { %4261 = vrot.lane.b32.xlu1 %v4248_v22, %s5527_s6 }
0x1b47   :  { %v4213_v24 = vpop.xlane.xlu1 %4212 }
0x1b48   :  { %v4215_v11 = vmul.f32 0.03125, %v4213_v24 }
0x1b49   :  { %v4210_v12 = vpop.xlane.xlu0 %4209 }
0x1b4a   :  { %v4217_v42 = vsub.f32 %v4207_v63, %v4215_v11  ;;  %v4214_v13 = vmul.f32 0.03125, %v4210_v12 }
0x1b4b   :  { %v4268_v20 = vpop.permute.xlu1 %4267 }
0x1b4c   :  { %v4216_v14 = vsub.f32 %v4206_v61, %v4214_v13  ;;  %v4219_v15 = vmul.f32 %v4217_v42, %v4217_v42  ;;  %5353 = vmatprep.subr.mxu0 %v4268_v20 }
0x1b4d   :  { %5354 = vmatpush3.msra.mxu0 %v4268_v20 }
0x1b4e   :  { %v4223_v17 = vsel %vm49_vm1, %v4219_v15, 0.0  ;;  %v4218_v19 = vmul.f32 %v4216_v14, %v4216_v14 }
0x1b4f   :  { %4224 = vadd.xlane.f32.xlu0 %v4223_v17  ;;  %v4264_v31 = vpop.permute.xlu1 %4263 }
0x1b50   :  { %v4220_v40 = vsel %vm49_vm1, %v4218_v19, 0.0 }
0x1b53   :  { %4221 = vadd.xlane.f32.xlu0 %v4220_v40  ;;  %v4262_v36 = vpop.permute.xlu1 %4261 }
0x1b69   :  { %4265 = vrot.lane.b32.xlu0 %v4250_v21, %s5527_s6 }
0x1bd8   :  { %v4225_v27 = vpop.xlane.xlu0 %4224 }
0x1bd9   :  { %v4227_v28 = vmul.f32 0.03125, %v4225_v27 }
0x1bdb   :  { %v4229_v30 = vadd.f32 1e-12, %v4227_v28 }
0x1bdc   :  { %v4222_v32 = vpop.xlane.xlu0 %4221 }
0x1bdd   :  { %5482 = vrsqrt.f32 %v4229_v30  ;;  %v4226_v3 = vmul.f32 0.03125, %v4222_v32 }
0x1bdf   :  { %v4228_v34 = vadd.f32 1e-12, %v4226_v3 }
0x1be0   :  { %v4266_v35 = vpop.permute.xlu0 %4265 }
0x1be1   :  { %5484 = vrsqrt.f32 %v4228_v34  ;;  %5355 = vmatprep.subr.mxu0 %v4266_v35  ;;  %v5537_v34 = vmov -1.0  }
0x1be2   :  { %5356 = vmatpush3.msra.mxu0 %v4266_v35 }
0x1be3   :  { %5357 = vmatprep.subr.mxu0 %v4264_v31 }
0x1be4   :  { %5358 = vmatpush3.msra.mxu0 %v4264_v31 }
0x1be5   :  { %5359 = vmatprep.subr.mxu0 %v4262_v36 }
0x1be6   :  { %5360 = vmatpush3.msra.mxu0 %v4262_v36 }
0x1bea   :  { %v5483_v29 = vpop.eup %5482 }
0x1beb   :  { %v4233_v37 = vmul.f32 %v5483_v29, %v4217_v42 }
0x1bed   :  { %v4240_v26 = vmul.f32 %v4759_v38, %v4233_v37 }
0x1bee   :  { %v5485_v39 = vpop.eup %5484 }
0x1bef   :  { %v4232_v1 = vmul.f32 %v5485_v39, %v4216_v14  ;;  %v6307_v23 = vadd.f32 %v4760_v18, %v4240_v26 }
0x1bf1   :  { %v4239_v16 = vmul.f32 %v4759_v38, %v4232_v1 }
0x1bf3   :  { %v6305_v7 = vadd.f32 %v4760_v18, %v4239_v16 }
0x1bf5   :  { %5361 = vmatprep.mubr.msk.f32.mxu0 %vm49_vm1, %v6305_v7 }
0x1bf6   :  { %5362 = vmatmul.mubr.msk.f32.vlgmr.msra.gmra.mxu0 %vm49_vm1, %v6307_v23 }
0x1cb6   :  { %v5363_v46 = vpop.f32.mrf.mxu0 }
0x1cb7   :  { %v4351_v47 = vadd.f32 %v5363_v46, %v4761_v45 }
0x1cb8   :  { %v4345_v48 = vpop.f32.mrf.mxu0 }
0x1cb9   :  { %v4357_v49 = vmul.f32 0.70710677, %v4351_v47  ;;  %v4346_v50 = vadd.f32 %v4761_v45, %v4345_v48  ;;  %v4355_v18 = vmul.f32 0.5, %v4351_v47 }
0x1cbb   :  { %v4363_v0 = vand.u32 2147483647, %v4357_v49  ;;  %v4356_v56 = vmul.f32 0.70710677, %v4346_v50  ;;  %vm4359_vm4 = vcmp.ge.f32.partialorder %v4357_v49, 0.0  ;;  %v4354_v26 = vmul.f32 0.5, %v4346_v50 }
0x1cbc   :  { %v4361_v35 = vsel %vm4359_vm4, 1.0, %v5537_v34 }
0x1cbd   :  { %v4365_v51 = vmul.f32 0.3275911, %v4363_v0  ;;  %v4362_v52 = vand.u32 2147483647, %v4356_v56  ;;  %v4391_v57 = vsub.f32 0.0, %v4363_v0  ;;  %vm4358_vm5 = vcmp.ge.f32.partialorder %v4356_v56, 0.0 }
0x1cbe   :  { %v4360_v38 = vsel %vm4358_vm5, 1.0, %v5537_v34 }
0x1cbf   :  { %v4367_v53 = vadd.f32 1.0, %v4365_v51  ;;  %v4364_v54 = vmul.f32 0.3275911, %v4362_v52  ;;  %v4390_v58 = vsub.f32 0.0, %v4362_v52  ;;  %v4393_v59 = vmul.f32 %v4391_v57, %v4363_v0  ;;  %v4545_v57 = vld [vmem:[%s6359_s3 + $0x28] sm:$0xff] }
0x1cc1   :  { %5486 = vrcp.f32 %v4367_v53  ;;  %v4366_v55 = vadd.f32 1.0, %v4364_v54  ;;  %v4392_v33 = vmul.f32 %v4390_v58, %v4362_v52  ;;  %v4396_v60 = vmul.f32 1.442695, %v4393_v59  ;;  %v4544_v58 = vld [vmem:[%s6359_s3] sm:$0xff] }
0x1cc3   :  { %5488 = vrcp.f32 %v4366_v55  ;;  %v4394_v10 = vmul.f32 1.442695, %v4392_v33  ;;  %v4546_v55 = vld [vmem:[%s6359_s3 + $0x50] sm:$0xff] }
0x1cc4   :  { %5490 = vpow2.f32 %v4396_v60 }
0x1cc5   :  { %5492 = vpow2.f32 %v4394_v10 }
0x1cce   :  { %v5487_v62 = vpop.eup %5486 }
0x1ccf   :  { %v4373_v63 = vmul.f32 1.0614054, %v5487_v62 }
0x1cd0   :  { %v5489_v61 = vpop.eup %5488 }
0x1cd1   :  { %v4375_v5 = vadd.f32 -1.4531521, %v4373_v63  ;;  %v4372_v9 = vmul.f32 1.0614054, %v5489_v61  ;;  %v5491_v27 = vpop.eup %5490 }
0x1cd2   :  { %v5493_v31 = vpop.eup %5492 }
0x1cd3   :  { %v4377_v22 = vmul.f32 %v5487_v62, %v4375_v5  ;;  %v4374_v24 = vadd.f32 -1.4531521, %v4372_v9  ;;  %v4767_v9 = vld [vmem:[%s6361_s5 + $0xc] ss:$0 sm:$0xff] }
0x1cd5   :  { %v4379_v11 = vadd.f32 1.4214138, %v4377_v22  ;;  %v4376_v12 = vmul.f32 %v5489_v61, %v4374_v24  ;;  %v4768_v22 = vld [vmem:[%s6361_s5 + $0xd] ss:$0 sm:$0xff] }
0x1cd7   :  { %v4381_v42 = vmul.f32 %v5487_v62, %v4379_v11  ;;  %v4378_v13 = vadd.f32 1.4214138, %v4376_v12 }
0x1cd9   :  { %v4383_v14 = vadd.f32 -0.28449672, %v4381_v42  ;;  %v4380_v15 = vmul.f32 %v5489_v61, %v4378_v13 }
0x1cdb   :  { %v4385_v17 = vmul.f32 %v5487_v62, %v4383_v14  ;;  %v4382_v19 = vadd.f32 -0.28449672, %v4380_v15  ;;  %v4769_v15 = vld [vmem:[%s6361_s5 + $0xe] ss:$0 sm:$0xff] }
0x1cdd   :  { %v4387_v40 = vadd.f32 0.2548296, %v4385_v17  ;;  %v4384_v20 = vmul.f32 %v5489_v61, %v4382_v19 }
0x1cdf   :  { %v4389_v21 = vmul.f32 %v5487_v62, %v4387_v40  ;;  %v4386_v28 = vadd.f32 0.2548296, %v4384_v20 }
0x1ce1   :  { %v4399_v30 = vmul.f32 %v5491_v27, %v4389_v21  ;;  %v4388_v32 = vmul.f32 %v5489_v61, %v4386_v28 }
0x1ce3   :  { %v4401_v3 = vsub.f32 1.0, %v4399_v30  ;;  %v4398_v36 = vmul.f32 %v5493_v31, %v4388_v32 }
0x1ce5   :  { %v4403_v29 = vmul.f32 %v4401_v3, %v4361_v35  ;;  %v4400_v37 = vsub.f32 1.0, %v4398_v36 }
0x1ce7   :  { %v4402_v39 = vmul.f32 %v4400_v37, %v4360_v38  ;;  %v4405_v1 = vadd.f32 1.0, %v4403_v29 }
0x1ce9   :  { %v4404_v16 = vadd.f32 1.0, %v4402_v39  ;;  %v4407_v6 = vmul.f32 %v4405_v1, %v4355_v18 }
0x1ceb   :  { %v4406_v8 = vmul.f32 %v4404_v16, %v4354_v26 }
0x1ced   :  { %5380 = vmatprep.mubr.msk.f32.mxu1 %vm137_vm2, %v4406_v8 }
0x1cee   :  { %5381 = vmatmul.mubr.msk.f32.vlgmr.msra.gmra.mxu1 %vm137_vm2, %v4407_v6 }
0x1dae   :  { %v5382_v2 = vpop.f32.mrf.mxu1 }
0x1daf   :  { %v4499_v4 = vadd.f32 %v5382_v2, %v4764_v25 }
0x1db0   :  { %v4493_v41 = vpop.f32.mrf.mxu1 }
0x1db1   :  { %v4503_v43 = vadd.f32 %v4499_v4, %v6307_v23  ;;  %v4494_v44 = vadd.f32 %v4764_v25, %v4493_v41 }
0x1db3   :  { %v4502_v45 = vadd.f32 %v4494_v44, %v6305_v7  ;;  %v4507_v46 = vsel %vm49_vm1, %v4503_v43, 0.0  ;;  %v4547_v7 = vld [vmem:[%s6359_s3 + $0x78] sm:$0xff] }
0x1db4   :  { %4508 = vadd.xlane.f32.xlu1 %v4507_v46  ;;  %5383 = vmatprep.subr.mxu0 %v4547_v7 }
0x1db5   :  { %v4504_v47 = vsel %vm49_vm1, %v4502_v45, 0.0  ;;  %5384 = vmatpush3.msra.mxu0 %v4547_v7 }
0x1db6   :  { %4505 = vadd.xlane.f32.xlu0 %v4504_v47  ;;  %5385 = vmatprep.subr.mxu0 %v4546_v55 }
0x1db7   :  { %5386 = vmatpush3.msra.mxu0 %v4546_v55 }
0x1db8   :  { %5387 = vmatprep.subr.mxu0 %v4545_v57 }
0x1db9   :  { %5388 = vmatpush3.msra.mxu0 %v4545_v57 }
0x1dba   :  { %5389 = vmatprep.subr.mxu0 %v4544_v58 }
0x1dbb   :  { %5390 = vmatpush3.msra.mxu0 %v4544_v58 }
0x1e3d   :  { %v4509_v48 = vpop.xlane.xlu1 %4508 }
0x1e3e   :  { %v4511_v49 = vmul.f32 0.03125, %v4509_v48 }
0x1e3f   :  { %v4506_v50 = vpop.xlane.xlu0 %4505 }
0x1e40   :  { %v4510_v0 = vmul.f32 0.03125, %v4506_v50  ;;  %v4513_v56 = vsub.f32 %v4503_v43, %v4511_v49 }
0x1e42   :  { %v4512_v51 = vsub.f32 %v4502_v45, %v4510_v0  ;;  %v4515_v54 = vmul.f32 %v4513_v56, %v4513_v56 }
0x1e44   :  { %v4514_v52 = vmul.f32 %v4512_v51, %v4512_v51  ;;  %v4519_v23 = vsel %vm49_vm1, %v4515_v54, 0.0 }
0x1e46   :  { %v4516_v53 = vsel %vm49_vm1, %v4514_v52, 0.0 }
0x1e47   :  { %4517 = vadd.xlane.f32.xlu0 %v4516_v53 }
0x1e4b   :  { %4520 = vadd.xlane.f32.xlu0 %v4519_v23 }
0x1ed0   :  { %v4518_v59 = vpop.xlane.xlu0 %4517 }
0x1ed1   :  { %v4522_v62 = vmul.f32 0.03125, %v4518_v59 }
0x1ed3   :  { %v4524_v33 = vadd.f32 1e-12, %v4522_v62 }
0x1ed4   :  { %v4521_v63 = vpop.xlane.xlu0 %4520 }
0x1ed5   :  { %5494 = vrsqrt.f32 %v4524_v33  ;;  %v4523_v60 = vmul.f32 0.03125, %v4521_v63 }
0x1ed7   :  { %v4525_v61 = vadd.f32 1e-12, %v4523_v60 }
0x1ed9   :  { %5496 = vrsqrt.f32 %v4525_v61 }
0x1ee2   :  { %v5495_v5 = vpop.eup %5494 }
0x1ee3   :  { %v4528_v10 = vmul.f32 %v5495_v5, %v4512_v51 }
0x1ee5   :  { %v4535_v24 = vmul.f32 %v4767_v9, %v4528_v10 }
0x1ee6   :  { %v5497_v11 = vpop.eup %5496 }
0x1ee7   :  { %v4529_v12 = vmul.f32 %v5497_v11, %v4513_v56  ;;  %v4542_v42 = vadd.f32 %v4768_v22, %v4535_v24 }
0x1ee9   :  { %v4536_v13 = vmul.f32 %v4767_v9, %v4529_v12  ;;  %5391 = vmatprep.mubr.msk.f32.mxu0 %vm49_vm1, %v4542_v42 }
0x1eeb   :  { %v4543_v14 = vadd.f32 %v4768_v22, %v4536_v13 }
0x1eed   :  { %5392 = vmatmul.mubr.msk.f32.vlgmr.msra.gmra.mxu0 %vm49_vm1, %v4543_v14 }
0x1fad   :  { %v5393_v17 = vpop.f32.mrf.mxu0 }
0x1fae   :  { %v4631_v19 = vadd.f32 %v5393_v17, %v4769_v15 }
0x1faf   :  { %v4625_v40 = vpop.f32.mrf.mxu0 }
0x1fb0   :  { %4635 = vst [vmem:[%s6363_s7 + $0x8] sm:$0xff] %v4631_v19  ;;  %v4626_v20 = vadd.f32 %v4769_v15, %v4625_v40 }
0x1fb2   :  { %4634 = vst [vmem:[%s6363_s7] sm:$0xff] %v4626_v20 }
0x1fb3   :  { %4644 = vsyncpa [#allocation3], 1 }

</bundles_post_ra>
